<compile_context>
chip_gen: v5e
topology: v5e:2x2
jax: 0.10.0
libtpu: 0.0.40
codegen_flags: <defaults>
</compile_context>

<pallas_src>
import math

import jax
import jax.numpy as jnp
from jax import lax
from jax.experimental import pallas as pl
from jax.experimental.pallas import tpu as pltpu


# ---------------------------------------------------------------------------
# Kernels
# ---------------------------------------------------------------------------

def _fused_kernel(x_ref, wq_ref, wk_ref, wv_ref, bq_ref, bk_ref, bv_ref, o_ref):
    """Small-n fast path: whole problem resident in VMEM, single launch.

    x_ref: (S, n); weights: (S, d); biases: (1, d); o_ref: (d_v, n).
    """
    xt = x_ref[...].T                                           # (n, S)
    q = (jnp.dot(xt, wq_ref[...], preferred_element_type=jnp.float32)
         + bq_ref[...]).astype(jnp.bfloat16)                    # scale folded in
    k = (jnp.dot(xt, wk_ref[...], preferred_element_type=jnp.float32)
         + bk_ref[...]).astype(jnp.bfloat16)
    v = (jnp.dot(xt, wv_ref[...], preferred_element_type=jnp.float32)
         + bv_ref[...]).astype(jnp.bfloat16)

    # scores = q @ k.T : contract d_k of both operands (no materialized k.T).
    s = lax.dot_general(q, k, (((1,), (1,)), ((), ())),
                        preferred_element_type=jnp.float32)     # (n, n)
    m = jnp.max(s, axis=-1, keepdims=True)
    p = jnp.exp(s - m)
    l = jnp.sum(p, axis=-1, keepdims=True)
    pv = jnp.dot(p.astype(jnp.bfloat16), v,
                 preferred_element_type=jnp.float32)            # (n, d_v)
    # Write directly in (d_v, n) layout -> lane-dense stores, no wrapper out.T.
    o_ref[...] = ((pv * pl.reciprocal(l, approx=True)).T).astype(o_ref.dtype)


def _qkv_proj_kernel(x_ref, wq_ref, wk_ref, wv_ref, bq_ref, bk_ref, bv_ref,
                     q_ref, k_ref, v_ref):
    """Tiled QKV projection. x_ref is a (S, tm) column tile of x (no wrapper
    x.T); q/k/v row tiles are written as three separate bf16 outputs."""
    xt = x_ref[...].T                                           # (tm, S)
    q_ref[...] = (jnp.dot(xt, wq_ref[...], preferred_element_type=jnp.float32)
                  + bq_ref[...]).astype(q_ref.dtype)
    k_ref[...] = (jnp.dot(xt, wk_ref[...], preferred_element_type=jnp.float32)
                  + bk_ref[...]).astype(k_ref.dtype)
    v_ref[...] = (jnp.dot(xt, wv_ref[...], preferred_element_type=jnp.float32)
                  + bv_ref[...]).astype(v_ref.dtype)


def _attn_resident_kernel(q_ref, k_ref, v_ref, o_ref):
    """Attention with K/V fully resident in VMEM; one-pass softmax per q tile.

    q_ref: (tq, d_k) bf16; k_ref: (n, d_k) bf16; v_ref: (n, d_v) bf16;
    o_ref: (d_v, tq) f32 (output already transposed / lane-dense).
    """
    s = lax.dot_general(q_ref[...], k_ref[...], (((1,), (1,)), ((), ())),
                        preferred_element_type=jnp.float32)     # (tq, n)
    m = jnp.max(s, axis=-1, keepdims=True)
    p = jnp.exp(s - m)
    l = jnp.sum(p, axis=-1, keepdims=True)
    pv = jnp.dot(p.astype(jnp.bfloat16), v_ref[...],
                 preferred_element_type=jnp.float32)            # (tq, d_v)
    o_ref[...] = ((pv * pl.reciprocal(l, approx=True)).T).astype(o_ref.dtype)


def _attn_streaming_kernel(q_ref, k_ref, v_ref, o_ref, m_sc, l_sc, acc_sc):
    """Flash-style online-softmax fallback for very large n (K/V streamed)."""
    ki = pl.program_id(1)

    @pl.when(ki == 0)
    def _():
        m_sc[...] = jnp.full_like(m_sc, -jnp.inf)
        l_sc[...] = jnp.zeros_like(l_sc)
        acc_sc[...] = jnp.zeros_like(acc_sc)

    s = lax.dot_general(q_ref[...], k_ref[...], (((1,), (1,)), ((), ())),
                        preferred_element_type=jnp.float32)     # (tq, tk)
    m_prev = m_sc[...]
    m_new = jnp.maximum(m_prev, jnp.max(s, axis=-1, keepdims=True))
    alpha = jnp.exp(m_prev - m_new)
    p = jnp.exp(s - m_new)
    l_sc[...] = alpha * l_sc[...] + jnp.sum(p, axis=-1, keepdims=True)
    acc_sc[...] = alpha * acc_sc[...] + jnp.dot(
        p.astype(jnp.bfloat16), v_ref[...], preferred_element_type=jnp.float32)
    m_sc[...] = m_new

    @pl.when(ki == pl.num_programs(1) - 1)
    def _():
        o_ref[...] = ((acc_sc[...] *
                       pl.reciprocal(l_sc[...], approx=True)).T).astype(o_ref.dtype)


# ---------------------------------------------------------------------------
# Wrapper
# ---------------------------------------------------------------------------

def _pick_tile(n, preferred):
    """Largest multiple of 128 that divides n and is <= preferred; falls back
    to the full extent (always legal as a full-array block)."""
    t = (min(preferred, n) // 128) * 128
    while t >= 128:
        if n % t == 0:
            return t
        t -= 128
    return n


def _kv_stream_spec(shape, index_map, depth=3):
    """Streamed k/v spec with deeper pipelining when the API supports it."""
    if hasattr(pl, "Buffered"):
        try:
            return pl.BlockSpec(shape, index_map, pipeline_mode=pl.Buffered(depth))
        except Exception:  # pragma: no cover - older API without pipeline_mode
            pass
    return pl.BlockSpec(shape, index_map)


def selfattention_forward(x, params, *, q_tile=256, k_tile=512, row_tile=1024,
                          mode="auto", vmem_limit=32 * 1024 * 1024):
    """x: (sample_size, n) -> (d_v, n), matching the PyTorch module."""
    S, n = x.shape
    d_k = params["wq"].shape[1]
    d_v = params["wv"].shape[1]
    f32 = jnp.float32

    # Fold 1/sqrt(d_k) into the Q weights/bias; keep weights f32 (tiny).
    scale = 1.0 / math.sqrt(d_k)
    wq = (params["wq"] * scale).astype(f32)
    bq = (params["bq"] * scale).reshape(1, d_k).astype(f32)
    wk = params["wk"].astype(f32)
    bk = params["bk"].reshape(1, d_k).astype(f32)
    wv = params["wv"].astype(f32)
    bv = params["bv"].reshape(1, d_v).astype(f32)

    tm = _pick_tile(n, row_tile)
    tq = _pick_tile(n, q_tile)
    tk = _pick_tile(n, k_tile)

    if mode == "auto":
        # Rough VMEM budgets (bytes); keep headroom under the 32 MiB scoped
        # default so the same tiling is safe on v7x (64 MiB physical).
        fused_bytes = (S * n * 4 + 3 * n * max(d_k, d_v) * 6
                       + 2 * n * n * 4 + 2 * d_v * n * 4)
        resident_bytes = (2 * tq * n * 4                  # scores + probs (f32)
                          + 4 * n * (d_k + d_v) * 2       # K,V bf16 (x2 buffers)
                          + 4 * tq * (d_k + d_v) * 2      # q tiles
                          + 2 * d_v * tq * 4)             # output tiles
        if fused_bytes <= 12 * 1024 * 1024:
            mode = "fused"
        elif resident_bytes <= 20 * 1024 * 1024:
            mode = "resident"
        else:
            mode = "streaming"
    if mode not in ("fused", "resident", "streaming"):
        raise ValueError(f"unknown mode: {mode}")

    # ---------------- small-n fast path: single fused kernel -----------------
    if mode == "fused":
        return pl.pallas_call(
            _fused_kernel,
            out_shape=jax.ShapeDtypeStruct((d_v, n), f32),
            compiler_params=pltpu.CompilerParams(vmem_limit_bytes=vmem_limit),
        )(x, wq, wk, wv, bq, bk, bv)

    # ---------------- 1) tiled QKV projection (3 separate outputs) -----------
    q, k, v = pl.pallas_call(
        _qkv_proj_kernel,
        out_shape=(jax.ShapeDtypeStruct((n, d_k), jnp.bfloat16),
                   jax.ShapeDtypeStruct((n, d_k), jnp.bfloat16),
                   jax.ShapeDtypeStruct((n, d_v), jnp.bfloat16)),
        grid=(n // tm,),
        in_specs=[
            pl.BlockSpec((S, tm), lambda i: (0, i)),      # column tile of x
            pl.BlockSpec((S, d_k), lambda i: (0, 0)),
            pl.BlockSpec((S, d_k), lambda i: (0, 0)),
            pl.BlockSpec((S, d_v), lambda i: (0, 0)),
            pl.BlockSpec((1, d_k), lambda i: (0, 0)),
            pl.BlockSpec((1, d_k), lambda i: (0, 0)),
            pl.BlockSpec((1, d_v), lambda i: (0, 0)),
        ],
        out_specs=(pl.BlockSpec((tm, d_k), lambda i: (i, 0)),
                   pl.BlockSpec((tm, d_k), lambda i: (i, 0)),
                   pl.BlockSpec((tm, d_v), lambda i: (i, 0))),
        compiler_params=pltpu.CompilerParams(
            dimension_semantics=("parallel",),
            vmem_limit_bytes=vmem_limit),
    )(x, wq, wk, wv, bq, bk, bv)

    # ---------------- 2a) attention with K/V resident in VMEM ----------------
    if mode == "resident":
        return pl.pallas_call(
            _attn_resident_kernel,
            out_shape=jax.ShapeDtypeStruct((d_v, n), f32),
            grid=(n // tq,),
            in_specs=[
                pl.BlockSpec((tq, d_k), lambda qi: (qi, 0)),
                pl.BlockSpec((n, d_k), lambda qi: (0, 0)),   # K resident
                pl.BlockSpec((n, d_v), lambda qi: (0, 0)),   # V resident
            ],
            out_specs=pl.BlockSpec((d_v, tq), lambda qi: (0, qi)),
            compiler_params=pltpu.CompilerParams(
                dimension_semantics=("parallel",),
                vmem_limit_bytes=vmem_limit),
        )(q, k, v)

    # ---------------- 2b) streaming flash fallback (very large n) ------------
    return pl.pallas_call(
        _attn_streaming_kernel,
        out_shape=jax.ShapeDtypeStruct((d_v, n), f32),
        grid=(n // tq, n // tk),
        in_specs=[
            pl.BlockSpec((tq, d_k), lambda qi, ki: (qi, 0)),
            _kv_stream_spec((tk, d_k), lambda qi, ki: (ki, 0)),
            _kv_stream_spec((tk, d_v), lambda qi, ki: (ki, 0)),
        ],
        out_specs=pl.BlockSpec((d_v, tq), lambda qi, ki: (0, qi)),
        scratch_shapes=[
            pltpu.VMEM((tq, 1), jnp.float32),             # running max
            pltpu.VMEM((tq, 1), jnp.float32),             # running denom
            pltpu.VMEM((tq, d_v), jnp.float32),           # output accumulator
        ],
        compiler_params=pltpu.CompilerParams(
            dimension_semantics=("parallel", "arbitrary"),
            vmem_limit_bytes=vmem_limit),
    )(q, k, v)


# ---------------------------------------------------------------------------
# Reference & params
# ---------------------------------------------------------------------------

def selfattention_reference(x, params):
    d_k = params["wq"].shape[1]
    xt = x.T
    q = xt @ params["wq"] + params["bq"]
    k = xt @ params["wk"] + params["bk"]
    v = xt @ params["wv"] + params["bv"]
    att = jax.nn.softmax(q @ k.T / jnp.sqrt(jnp.float32(d_k)), axis=1)
    return (att @ v).T


def init_params(key, sample_size, d_k, d_v):
    # Same distribution as nn.Linear defaults, stored pre-transposed: W is (in, out).
    ks = jax.random.split(key, 6)
    bound = 1.0 / float(sample_size) ** 0.5

    def w(k, fan_out):
        return jax.random.uniform(k, (sample_size, fan_out), jnp.float32,
                                  -bound, bound)

    def b(k, fan_out):
        return jax.random.uniform(k, (fan_out,), jnp.float32, -bound, bound)

    return {
        "wq": w(ks[0], d_k), "bq": b(ks[1], d_k),
        "wk": w(ks[2], d_k), "bk": b(ks[3], d_k),
        "wv": w(ks[4], d_v), "bv": b(ks[5], d_v),
    }


if __name__ == "__main__":
    sample_size, d_k, d_v = 64, 32, 32
    key = jax.random.PRNGKey(0)
    k_p, k_x1, k_x2 = jax.random.split(key, 3)
    params = init_params(k_p, sample_size, d_k, d_v)

    # 1) Demo shape -> auto-selected small-n fused kernel.
    n = 256
    x = jax.random.normal(k_x1, (sample_size, n), jnp.float32)
    out = selfattention_forward(x, params)
    jax.block_until_ready(out)
    assert out.shape == (d_v, n) and out.dtype == jnp.float32
    ref = selfattention_reference(x, params)
    err = float(jnp.max(jnp.abs(out - ref)))
    assert err < 1e-2, f"fused path max abs error {err}"

    # 2) Larger n -> exercise the tiled projection + resident-KV attention and
    #    the streaming (flash) fallback.
    n_big = 1024
    x_big = jax.random.normal(k_x2, (sample_size, n_big), jnp.float32)
    ref_big = selfattention_reference(x_big, params)
    for m in ("resident", "streaming"):
        out_big = selfattention_forward(x_big, params, mode=m)
        jax.block_until_ready(out_big)
        err = float(jnp.max(jnp.abs(out_big - ref_big)))
        assert err < 1e-2, f"{m} path max abs error {err}"

    print("KERNEL_OK")
</pallas_src>

<mosaic_0001>
module attributes {stable_mosaic.version = 11 : i64} {
  func.func @_fused_kernel(%arg0: memref<64x256xf32, #tpu.memory_space<vmem>>, %arg1: memref<64x32xf32, #tpu.memory_space<vmem>>, %arg2: memref<64x32xf32, #tpu.memory_space<vmem>>, %arg3: memref<64x32xf32, #tpu.memory_space<vmem>>, %arg4: memref<1x32xf32, #tpu.memory_space<vmem>>, %arg5: memref<1x32xf32, #tpu.memory_space<vmem>>, %arg6: memref<1x32xf32, #tpu.memory_space<vmem>>, %arg7: memref<32x256xf32, #tpu.memory_space<vmem>>) attributes {dimension_semantics = [], scalar_prefetch = 0 : i64, scratch_operands = 0 : i64, tpu.core_type = #tpu.core_type<tc>} {
    %c0 = arith.constant 0 : index
    %c0_0 = arith.constant 0 : index
    %0 = vector.load %arg0[%c0, %c0_0] : memref<64x256xf32, #tpu.memory_space<vmem>>, vector<64x256xf32>
    %1 = tpu.transpose %0, [1, 0] : vector<64x256xf32> -> vector<256x64xf32>
    %c0_1 = arith.constant 0 : index
    %c0_2 = arith.constant 0 : index
    %2 = vector.load %arg1[%c0_1, %c0_2] : memref<64x32xf32, #tpu.memory_space<vmem>>, vector<64x32xf32>
    %cst = arith.constant dense<0.000000e+00> : vector<256x32xf32>
    %3 = tpu.matmul %1, %2, %cst {dimension_numbers = #tpu.dot_dimension_numbers<[1], [0], [0], [1], [0, 0, 1, 1], [], []>} : vector<256x64xf32>, vector<64x32xf32>, vector<256x32xf32> -> vector<256x32xf32>
    %c0_3 = arith.constant 0 : index
    %c0_4 = arith.constant 0 : index
    %4 = vector.load %arg4[%c0_3, %c0_4] : memref<1x32xf32, #tpu.memory_space<vmem>>, vector<1x32xf32>
    %5 = vector.broadcast %4 : vector<1x32xf32> to vector<256x32xf32>
    %6 = arith.addf %3, %5 : vector<256x32xf32>
    %7 = arith.truncf %6 : vector<256x32xf32> to vector<256x32xbf16>
    %c0_5 = arith.constant 0 : index
    %c0_6 = arith.constant 0 : index
    %8 = vector.load %arg2[%c0_5, %c0_6] : memref<64x32xf32, #tpu.memory_space<vmem>>, vector<64x32xf32>
    %cst_7 = arith.constant dense<0.000000e+00> : vector<256x32xf32>
    %9 = tpu.matmul %1, %8, %cst_7 {dimension_numbers = #tpu.dot_dimension_numbers<[1], [0], [0], [1], [0, 0, 1, 1], [], []>} : vector<256x64xf32>, vector<64x32xf32>, vector<256x32xf32> -> vector<256x32xf32>
    %c0_8 = arith.constant 0 : index
    %c0_9 = arith.constant 0 : index
    %10 = vector.load %arg5[%c0_8, %c0_9] : memref<1x32xf32, #tpu.memory_space<vmem>>, vector<1x32xf32>
    %11 = vector.broadcast %10 : vector<1x32xf32> to vector<256x32xf32>
    %12 = arith.addf %9, %11 : vector<256x32xf32>
    %13 = arith.truncf %12 : vector<256x32xf32> to vector<256x32xbf16>
    %c0_10 = arith.constant 0 : index
    %c0_11 = arith.constant 0 : index
    %14 = vector.load %arg3[%c0_10, %c0_11] : memref<64x32xf32, #tpu.memory_space<vmem>>, vector<64x32xf32>
    %cst_12 = arith.constant dense<0.000000e+00> : vector<256x32xf32>
    %15 = tpu.matmul %1, %14, %cst_12 {dimension_numbers = #tpu.dot_dimension_numbers<[1], [0], [0], [1], [0, 0, 1, 1], [], []>} : vector<256x64xf32>, vector<64x32xf32>, vector<256x32xf32> -> vector<256x32xf32>
    %c0_13 = arith.constant 0 : index
    %c0_14 = arith.constant 0 : index
    %16 = vector.load %arg6[%c0_13, %c0_14] : memref<1x32xf32, #tpu.memory_space<vmem>>, vector<1x32xf32>
    %17 = vector.broadcast %16 : vector<1x32xf32> to vector<256x32xf32>
    %18 = arith.addf %15, %17 : vector<256x32xf32>
    %19 = arith.truncf %18 : vector<256x32xf32> to vector<256x32xbf16>
    %cst_15 = arith.constant dense<0.000000e+00> : vector<256x256xf32>
    %20 = tpu.matmul %7, %13, %cst_15 {dimension_numbers = #tpu.dot_dimension_numbers<[1], [1], [0], [0], [0, 0, 1, 0], [], []>} : vector<256x32xbf16>, vector<256x32xbf16>, vector<256x256xf32> -> vector<256x256xf32>
    %cst_16 = arith.constant dense<0xFF800000> : vector<256xf32>
    %21 = vector.multi_reduction <maximumf>, %20, %cst_16 [1] : vector<256x256xf32> to vector<256xf32>
    %22 = vector.shape_cast %21 : vector<256xf32> to vector<256x1xf32>
    %23 = vector.broadcast %22 : vector<256x1xf32> to vector<256x256xf32>
    %24 = arith.subf %20, %23 : vector<256x256xf32>
    %25 = math.exp %24 : vector<256x256xf32>
    %cst_17 = arith.constant dense<0.000000e+00> : vector<256xf32>
    %26 = vector.multi_reduction <add>, %25, %cst_17 [1] : vector<256x256xf32> to vector<256xf32>
    %27 = vector.shape_cast %26 : vector<256xf32> to vector<256x1xf32>
    %28 = arith.truncf %25 : vector<256x256xf32> to vector<256x256xbf16>
    %cst_18 = arith.constant dense<0.000000e+00> : vector<256x32xf32>
    %29 = tpu.matmul %28, %19, %cst_18 {dimension_numbers = #tpu.dot_dimension_numbers<[1], [0], [0], [1], [0, 0, 1, 1], [], []>} : vector<256x256xbf16>, vector<256x32xbf16>, vector<256x32xf32> -> vector<256x32xf32>
    %30 = tpu.reciprocal %27 {approx = true} : vector<256x1xf32> -> vector<256x1xf32>
    %31 = vector.broadcast %30 : vector<256x1xf32> to vector<256x32xf32>
    %32 = arith.mulf %29, %31 : vector<256x32xf32>
    %33 = tpu.transpose %32, [1, 0] : vector<256x32xf32> -> vector<32x256xf32>
    %c0_19 = arith.constant 0 : index
    %c0_20 = arith.constant 0 : index
    %34 = vector.load %arg7[%c0_19, %c0_20] : memref<32x256xf32, #tpu.memory_space<vmem>>, vector<32x256xf32>
    tpu.vector_store %arg7[%c0_19, %c0_20], %33 {strides = array<i32>} : memref<32x256xf32, #tpu.memory_space<vmem>>, vector<32x256xf32>,
    return
  }
}

</mosaic_0001>

<bundles_post_ra>
// kernel: tpu_custom_call.1
= control target key start
LH: loop header
LB: loop body
LE: loop exit
PB: predicated region body
PF: predicated region fallthrough
CT: control target
= control target key end

     0   :  { %s3046_s0 = inlined_call_operand.vmem [shape: f32[64,256], index: 0, kind: input, shape index: {}]   ;;  %s3047_s1 = inlined_call_operand.vmem [shape: f32[64,32], index: 1, kind: input, shape index: {}]   ;;  %s3048_s2 = inlined_call_operand.vmem [shape: f32[64,32], index: 2, kind: input, shape index: {}]   ;;  %s3049_s3 = inlined_call_operand.vmem [shape: f32[64,32], index: 3, kind: input, shape index: {}]   ;;  %s3050_s4 = inlined_call_operand.vmem [shape: f32[1,32], index: 4, kind: input, shape index: {}]   ;;  %s3051_s5 = inlined_call_operand.vmem [shape: f32[1,32], index: 5, kind: input, shape index: {}]   ;;  %s3052_s6 = inlined_call_operand.vmem [shape: f32[1,32], index: 6, kind: input, shape index: {}]   ;;  %s3053_s7 = inlined_call_operand.hbm [shape: f32[32,256], index: 7, kind: output, shape index: {}]  }
   0x1   :  { %v27_v0 = vld [vmem:[%s3046_s0] sm:$0xff] }
   0x2   :  { %43 = vxpose.xlu0.b32.start [1/8] (short) %v27_v0, 128 }
   0x3   :  { %12 = vsyncpa [#allocation3], 0  ;;  %v29_v1 = vld [vmem:[%s3046_s0 + $0x10] sm:$0xff]  ;;  %v31_v2 = vld [vmem:[%s3046_s0 + $0x20] sm:$0xff]  ;;  %vm119_vm0 = vcmask 523264   ;;  %vm627_vm1 = vcmask 261120  }
   0x4   :  { %v33_v3 = vld [vmem:[%s3046_s0 + $0x30] sm:$0xff]  ;;  %v28_v4 = vld [vmem:[%s3046_s0 + $0x8] sm:$0xff]  ;;  %v114_v5 = vld [vmem:[%s3047_s1 + $0x38] sm:$0xff]  ;;  %s1638_s13 = sshll.u32 %s3053_s7, 4  ;;  %s2028_s14 = smov 256   ;;  %s1639_s13 = int_to_ptr.hbm [resolvable:$true] %s1638_s13 }
   0x5   :  { %75 = vxpose.xlu1.b32.start [1/8] (short) %v28_v4, 128  ;;  %v113_v6 = vld [vmem:[%s3047_s1 + $0x30] sm:$0xff]  ;;  %224 = vmatpush.msra.mxu0 %v114_v5  ;;  %v112_v7 = vld [vmem:[%s3047_s1 + $0x28] sm:$0xff]  ;;  %v35_v8 = vld [vmem:[%s3046_s0 + $0x40] sm:$0xff]  ;;  %s2029_s15 = smov 16  }
   0x6   :  { %1778 = vmatpush.msra.mxu3 %v114_v5  ;;  %v111_v9 = vld [vmem:[%s3047_s1 + $0x20] sm:$0xff]  ;;  %v30_v10 = vld [vmem:[%s3046_s0 + $0x18] sm:$0xff]  ;;  %v109_v12 = vld [vmem:[%s3047_s1 + $0x10] sm:$0xff] }
   0x7   :  { %225 = vmatpush.msra.mxu0 %v113_v6  ;;  %v110_v11 = vld [vmem:[%s3047_s1 + $0x18] sm:$0xff]  ;;  %v108_v13 = vld [vmem:[%s3047_s1 + $0x8] sm:$0xff]  ;;  %v37_v14 = vld [vmem:[%s3046_s0 + $0x50] sm:$0xff] }
   0x8   :  { %1779 = vmatpush.msra.mxu3 %v113_v6  ;;  %v107_v15 = vld [vmem:[%s3047_s1] sm:$0xff]  ;;  %v32_v16 = vld [vmem:[%s3046_s0 + $0x28] sm:$0xff]  ;;  %v34_v18 = vld [vmem:[%s3046_s0 + $0x38] sm:$0xff] }
   0x9   :  { %226 = vmatpush.msra.mxu0 %v112_v7  ;;  %v39_v17 = vld [vmem:[%s3046_s0 + $0x60] sm:$0xff]  ;;  %v41_v19 = vld [vmem:[%s3046_s0 + $0x70] sm:$0xff]  ;;  %v36_v20 = vld [vmem:[%s3046_s0 + $0x48] sm:$0xff] }
   0xa   :  { %44 = vxpose.xlu0.b32.cont [2/8] (short) %v29_v1, 128  ;;  %1780 = vmatpush.msra.mxu3 %v112_v7  ;;  %v38_v21 = vld [vmem:[%s3046_s0 + $0x58] sm:$0xff]  ;;  %v40_v22 = vld [vmem:[%s3046_s0 + $0x68] sm:$0xff]  ;;  %v351_v29 = vld [vmem:[%s3048_s2 + $0x30] sm:$0xff] }
   0xb   :  { %227 = vmatpush.msra.mxu0 %v111_v9  ;;  %v42_v23 = vld [vmem:[%s3046_s0 + $0x78] sm:$0xff]  ;;  %v492_v30 = vld [vmem:[%s3049_s3 + $0x30] sm:$0xff]  ;;  %v350_v31 = vld [vmem:[%s3048_s2 + $0x28] sm:$0xff] }
   0xc   :  { %1781 = vmatpush.msra.mxu3 %v111_v9  ;;  %v352_v27 = vld [vmem:[%s3048_s2 + $0x38] sm:$0xff]  ;;  %v491_v32 = vld [vmem:[%s3049_s3 + $0x28] sm:$0xff]  ;;  %v349_v33 = vld [vmem:[%s3048_s2 + $0x20] sm:$0xff] }
   0xd   :  { %76 = vxpose.xlu1.b32.cont [2/8] (short) %v30_v10, 128  ;;  %228 = vmatpush.msra.mxu0 %v110_v11  ;;  %v493_v28 = vld [vmem:[%s3049_s3 + $0x38] sm:$0xff]  ;;  %v490_v34 = vld [vmem:[%s3049_s3 + $0x20] sm:$0xff]  ;;  %v347_v38 = vld [vmem:[%s3048_s2 + $0x10] sm:$0xff] }
   0xe   :  { %1782 = vmatpush.msra.mxu3 %v110_v11  ;;  %1786 = vmatpush.msra.mxu1 %v352_v27  ;;  %v348_v36 = vld [vmem:[%s3048_s2 + $0x18] sm:$0xff]  ;;  %v488_v39 = vld [vmem:[%s3049_s3 + $0x10] sm:$0xff]  ;;  %v346_v40 = vld [vmem:[%s3048_s2 + $0x8] sm:$0xff] }
   0xf   :  { %229 = vmatpush.msra.mxu0 %v109_v12  ;;  %1794 = vmatpush.msra.mxu2 %v493_v28  ;;  %v489_v37 = vld [vmem:[%s3049_s3 + $0x18] sm:$0xff]  ;;  %v487_v41 = vld [vmem:[%s3049_s3 + $0x8] sm:$0xff]  ;;  %v345_v42 = vld [vmem:[%s3048_s2] sm:$0xff] }
  0x10   :  { %1783 = vmatpush.msra.mxu3 %v109_v12  ;;  %1787 = vmatpush.msra.mxu1 %v351_v29  ;;  %v486_v43 = vld [vmem:[%s3049_s3] sm:$0xff] }
  0x11   :  { %230 = vmatpush.msra.mxu0 %v108_v13  ;;  %1795 = vmatpush.msra.mxu2 %v492_v30 }
  0x12   :  { %45 = vxpose.xlu0.b32.cont [3/8] (short) %v31_v2, 128  ;;  %1784 = vmatpush.msra.mxu3 %v108_v13 }
  0x13   :  { %231 = vmatpush.msra.mxu0 %v107_v15  ;;  %1788 = vmatpush.msra.mxu1 %v350_v31 }
  0x14   :  { %1785 = vmatpush.msra.mxu3 %v107_v15  ;;  %1796 = vmatpush.msra.mxu2 %v491_v32 }
  0x15   :  { %77 = vxpose.xlu1.b32.cont [3/8] (short) %v32_v16, 128  ;;  %365 = vmatpush.msrb.mxu0 %v352_v27 }
  0x16   :  { %1789 = vmatpush.msra.mxu1 %v349_v33  ;;  %1797 = vmatpush.msra.mxu2 %v490_v34 }
  0x17   :  { %366 = vmatpush.msrb.mxu0 %v351_v29 }
  0x18   :  { %1790 = vmatpush.msra.mxu1 %v348_v36  ;;  %1798 = vmatpush.msra.mxu2 %v489_v37 }
  0x19   :  { %367 = vmatpush.msrb.mxu0 %v350_v31 }
  0x1a   :  { %46 = vxpose.xlu0.b32.cont [4/8] (short) %v33_v3, 128  ;;  %1791 = vmatpush.msra.mxu1 %v347_v38 }
  0x1b   :  { %368 = vmatpush.msrb.mxu0 %v349_v33  ;;  %1799 = vmatpush.msra.mxu2 %v488_v39 }
  0x1c   :  { %1792 = vmatpush.msra.mxu1 %v346_v40 }
  0x1d   :  { %78 = vxpose.xlu1.b32.cont [4/8] (short) %v34_v18, 128  ;;  %369 = vmatpush.msrb.mxu0 %v348_v36  ;;  %v2368_v36 = vld [vmem:[%s3051_s5] ss:$0 sm:$0xff] }
  0x1e   :  { %1800 = vmatpush.msra.mxu2 %v487_v41  ;;  %1793 = vmatpush.msra.mxu1 %v345_v42 }
  0x1f   :  { %370 = vmatpush.msrb.mxu0 %v347_v38 }
  0x20   :  { %1801 = vmatpush.msra.mxu2 %v486_v43 }
  0x21   :  { %371 = vmatpush.msrb.mxu0 %v346_v40 }
  0x22   :  { %47 = vxpose.xlu0.b32.cont [5/8] (short) %v35_v8, 128 }
  0x23   :  { %372 = vmatpush.msrb.mxu0 %v345_v42 }
  0x25   :  { %79 = vxpose.xlu1.b32.cont [5/8] (short) %v36_v20, 128 }
  0x2a   :  { %48 = vxpose.xlu0.b32.cont [6/8] (short) %v37_v14, 128 }
  0x2d   :  { %80 = vxpose.xlu1.b32.cont [6/8] (short) %v38_v21, 128 }
  0x32   :  { %49 = vxpose.xlu0.b32.cont [7/8] (short) %v39_v17, 128 }
  0x35   :  { %81 = vxpose.xlu1.b32.cont [7/8] (short) %v40_v22, 128 }
  0x3a   :  { %50 = vxpose.xlu0.b32.end [8/8] (short) %v41_v19, 128 }
  0x3d   :  { %82 = vxpose.xlu1.b32.end [8/8] (short) %v42_v23, 128 }
  0xa6   :  { %v2142_v24 = vpop.trf.xlu0 }
  0xa7   :  { %1650 = vmatmul.msk.f32.vlgmr.msra.gmra.mxu0 %vm119_vm0, %v2142_v24 }
  0xa8   :  { %506 = vmatpush.msra.mxu0 %v493_v28 }
  0xa9   :  { %v91_v53 = vpop.trf.xlu1 }
  0xaa   :  { %507 = vmatpush.msra.mxu0 %v492_v30 }
  0xac   :  { %508 = vmatpush.msra.mxu0 %v491_v32 }
  0xae   :  { %v2146_v25 = vpop.trf.xlu0  ;;  %509 = vmatpush.msra.mxu0 %v490_v34 }
  0xaf   :  { %1651 = vmatmul.msk.f32.gmra.mxu0 %vm119_vm0, %v2146_v25 }
  0xb0   :  { %510 = vmatpush.msra.mxu0 %v489_v37 }
  0xb1   :  { %v92_v55 = vpop.trf.xlu1 }
  0xb2   :  { %511 = vmatpush.msra.mxu0 %v488_v39 }
  0xb4   :  { %512 = vmatpush.msra.mxu0 %v487_v41 }
  0xb6   :  { %v2150_v26 = vpop.trf.xlu0  ;;  %513 = vmatpush.msra.mxu0 %v486_v43 }
  0xb7   :  { %1652 = vmatmul.msk.f32.gmra.mxu0 %vm119_vm0, %v2150_v26 }
  0xb9   :  { %v93_v57 = vpop.trf.xlu1 }
  0xbe   :  { %v2178_v35 = vpop.trf.xlu0 }
  0xbf   :  { %1653 = vmatmul.msk.f32.gmra.mxu0 %vm119_vm0, %v2178_v35 }
  0xc1   :  { %v94_v60 = vpop.trf.xlu1 }
  0xc6   :  { %v2206_v44 = vpop.trf.xlu0 }
  0xc7   :  { %1654 = vmatmul.msk.f32.gmra.mxu0 %vm119_vm0, %v2206_v44 }
  0xc9   :  { %v95_v62 = vpop.trf.xlu1 }
  0xce   :  { %v2210_v45 = vpop.trf.xlu0 }
  0xcf   :  { %1655 = vmatmul.msk.f32.gmra.mxu0 %vm119_vm0, %v2210_v45 }
  0xd1   :  { %v96_v0 = vpop.trf.xlu1 }
  0xd6   :  { %v2214_v46 = vpop.trf.xlu0 }
  0xd7   :  { %1656 = vmatmul.msk.f32.gmra.mxu0 %vm119_vm0, %v2214_v46 }
  0xd9   :  { %v97_v2 = vpop.trf.xlu1 }
  0xde   :  { %v2218_v47 = vpop.trf.xlu0 }
  0xdf   :  { %1657 = vmatmul.msk.f32.gmra.mxu0 %vm119_vm0, %v2218_v47 }
  0xe1   :  { %v98_v5 = vpop.trf.xlu1 }
  0xe6   :  { %v67_v48 = vpop.trf.xlu0 }
  0xe7   :  { %1658 = vmatmul.msk.f32.vlgmr.msra.gmra.mxu3 %vm119_vm0, %v67_v48  ;;  %1682 = vmatmul.msk.f32.vlgmr.msrb.gmra.mxu0 %vm119_vm0, %v2142_v24 }
  0xe8   :  { %1690 = vmatmul.msk.f32.vlgmr.msra.gmra.mxu1 %vm119_vm0, %v67_v48  ;;  %1722 = vmatmul.msk.f32.vlgmr.msra.gmra.mxu2 %vm119_vm0, %v67_v48 }
  0xe9   :  { %v99_v7 = vpop.trf.xlu1 }
  0xee   :  { %v68_v49 = vpop.trf.xlu0 }
  0xef   :  { %1659 = vmatmul.msk.f32.gmra.mxu3 %vm119_vm0, %v68_v49  ;;  %1683 = vmatmul.msk.f32.gmra.mxu0 %vm119_vm0, %v2146_v25 }
  0xf0   :  { %1691 = vmatmul.msk.f32.gmra.mxu1 %vm119_vm0, %v68_v49  ;;  %1723 = vmatmul.msk.f32.gmra.mxu2 %vm119_vm0, %v68_v49 }
  0xf1   :  { %v100_v9 = vpop.trf.xlu1 }
  0xf6   :  { %v69_v50 = vpop.trf.xlu0 }
  0xf7   :  { %1660 = vmatmul.msk.f32.gmra.mxu3 %vm119_vm0, %v69_v50  ;;  %1684 = vmatmul.msk.f32.gmra.mxu0 %vm119_vm0, %v2150_v26 }
  0xf8   :  { %1692 = vmatmul.msk.f32.gmra.mxu1 %vm119_vm0, %v69_v50  ;;  %1724 = vmatmul.msk.f32.gmra.mxu2 %vm119_vm0, %v69_v50 }
  0xf9   :  { %v101_v12 = vpop.trf.xlu1 }
  0xfe   :  { %v70_v51 = vpop.trf.xlu0 }
  0xff   :  { %1661 = vmatmul.msk.f32.gmra.mxu3 %vm119_vm0, %v70_v51  ;;  %1685 = vmatmul.msk.f32.gmra.mxu0 %vm119_vm0, %v2178_v35 }
 0x100   :  { %1693 = vmatmul.msk.f32.gmra.mxu1 %vm119_vm0, %v70_v51  ;;  %1725 = vmatmul.msk.f32.gmra.mxu2 %vm119_vm0, %v70_v51 }
 0x101   :  { %v102_v18 = vpop.trf.xlu1 }
 0x106   :  { %v71_v52 = vpop.trf.xlu0 }
 0x107   :  { %1662 = vmatmul.msk.f32.gmra.mxu3 %vm119_vm0, %v71_v52  ;;  %1686 = vmatmul.msk.f32.gmra.mxu0 %vm119_vm0, %v2206_v44 }
 0x108   :  { %1694 = vmatmul.msk.f32.gmra.mxu1 %vm119_vm0, %v71_v52  ;;  %1726 = vmatmul.msk.f32.gmra.mxu2 %vm119_vm0, %v71_v52 }
 0x109   :  { %v103_v23 = vpop.trf.xlu1 }
 0x10e   :  { %v72_v54 = vpop.trf.xlu0 }
 0x10f   :  { %1663 = vmatmul.msk.f32.gmra.mxu3 %vm119_vm0, %v72_v54  ;;  %1687 = vmatmul.msk.f32.gmra.mxu0 %vm119_vm0, %v2210_v45 }
 0x110   :  { %1695 = vmatmul.msk.f32.gmra.mxu1 %vm119_vm0, %v72_v54  ;;  %1727 = vmatmul.msk.f32.gmra.mxu2 %vm119_vm0, %v72_v54 }
 0x111   :  { %v104_v27 = vpop.trf.xlu1 }
 0x116   :  { %v73_v56 = vpop.trf.xlu0 }
 0x117   :  { %1664 = vmatmul.msk.f32.gmra.mxu3 %vm119_vm0, %v73_v56  ;;  %1688 = vmatmul.msk.f32.gmra.mxu0 %vm119_vm0, %v2214_v46 }
 0x118   :  { %1696 = vmatmul.msk.f32.gmra.mxu1 %vm119_vm0, %v73_v56  ;;  %1728 = vmatmul.msk.f32.gmra.mxu2 %vm119_vm0, %v73_v56 }
 0x119   :  { %v105_v31 = vpop.trf.xlu1 }
 0x11e   :  { %v74_v58 = vpop.trf.xlu0 }
 0x11f   :  { %1665 = vmatmul.msk.f32.gmra.mxu3 %vm119_vm0, %v74_v58  ;;  %1689 = vmatmul.msk.f32.gmra.mxu0 %vm119_vm0, %v2218_v47 }
 0x120   :  { %1697 = vmatmul.msk.f32.gmra.mxu1 %vm119_vm0, %v74_v58  ;;  %1729 = vmatmul.msk.f32.gmra.mxu2 %vm119_vm0, %v74_v58 }
 0x121   :  { %v106_v38 = vpop.trf.xlu1 }
 0x124   :  { %v2262_v59 = vpop.f32.mrf.mxu0 }
 0x127   :  { %1666 = vmatmul.msk.f32.gmra.mxu3 %vm119_vm0, %v91_v53  ;;  %1714 = vmatmul.msk.f32.vlgmr.msra.gmra.mxu0 %vm119_vm0, %v2142_v24 }
 0x128   :  { %1698 = vmatmul.msk.f32.gmra.mxu1 %vm119_vm0, %v91_v53  ;;  %1730 = vmatmul.msk.f32.gmra.mxu2 %vm119_vm0, %v91_v53 }
 0x12c   :  { %v2269_v61 = vpop.f32.mrf.mxu0 }
 0x12f   :  { %1667 = vmatmul.msk.f32.gmra.mxu3 %vm119_vm0, %v92_v55  ;;  %1715 = vmatmul.msk.f32.gmra.mxu0 %vm119_vm0, %v2146_v25 }
 0x130   :  { %1699 = vmatmul.msk.f32.gmra.mxu1 %vm119_vm0, %v92_v55  ;;  %1731 = vmatmul.msk.f32.gmra.mxu2 %vm119_vm0, %v92_v55 }
 0x134   :  { %v2276_v63 = vpop.f32.mrf.mxu0 }
 0x137   :  { %1668 = vmatmul.msk.f32.gmra.mxu3 %vm119_vm0, %v93_v57  ;;  %1716 = vmatmul.msk.f32.gmra.mxu0 %vm119_vm0, %v2150_v26 }
 0x138   :  { %1700 = vmatmul.msk.f32.gmra.mxu1 %vm119_vm0, %v93_v57  ;;  %1732 = vmatmul.msk.f32.gmra.mxu2 %vm119_vm0, %v93_v57 }
 0x13c   :  { %v2283_v1 = vpop.f32.mrf.mxu0 }
 0x13f   :  { %1669 = vmatmul.msk.f32.gmra.mxu3 %vm119_vm0, %v94_v60  ;;  %1717 = vmatmul.msk.f32.gmra.mxu0 %vm119_vm0, %v2178_v35 }
 0x140   :  { %1701 = vmatmul.msk.f32.gmra.mxu1 %vm119_vm0, %v94_v60  ;;  %1733 = vmatmul.msk.f32.gmra.mxu2 %vm119_vm0, %v94_v60 }
 0x144   :  { %v2290_v3 = vpop.f32.mrf.mxu0 }
 0x147   :  { %1670 = vmatmul.msk.f32.gmra.mxu3 %vm119_vm0, %v95_v62  ;;  %1718 = vmatmul.msk.f32.gmra.mxu0 %vm119_vm0, %v2206_v44  ;;  %v2380_v44 = vld [vmem:[%s3052_s6] ss:$0 sm:$0xff] }
 0x148   :  { %1702 = vmatmul.msk.f32.gmra.mxu1 %vm119_vm0, %v95_v62  ;;  %1734 = vmatmul.msk.f32.gmra.mxu2 %vm119_vm0, %v95_v62 }
 0x14c   :  { %v2297_v4 = vpop.f32.mrf.mxu0 }
 0x14f   :  { %1671 = vmatmul.msk.f32.gmra.mxu3 %vm119_vm0, %v96_v0  ;;  %1719 = vmatmul.msk.f32.gmra.mxu0 %vm119_vm0, %v2210_v45 }
 0x150   :  { %1703 = vmatmul.msk.f32.gmra.mxu1 %vm119_vm0, %v96_v0  ;;  %1735 = vmatmul.msk.f32.gmra.mxu2 %vm119_vm0, %v96_v0 }
 0x154   :  { %v2304_v6 = vpop.f32.mrf.mxu0 }
 0x157   :  { %1672 = vmatmul.msk.f32.gmra.mxu3 %vm119_vm0, %v97_v2  ;;  %1720 = vmatmul.msk.f32.gmra.mxu0 %vm119_vm0, %v2214_v46 }
 0x158   :  { %1704 = vmatmul.msk.f32.gmra.mxu1 %vm119_vm0, %v97_v2  ;;  %1736 = vmatmul.msk.f32.gmra.mxu2 %vm119_vm0, %v97_v2 }
 0x15c   :  { %v2311_v8 = vpop.f32.mrf.mxu0 }
 0x15f   :  { %1673 = vmatmul.msk.f32.gmra.mxu3 %vm119_vm0, %v98_v5  ;;  %1721 = vmatmul.msk.f32.gmra.mxu0 %vm119_vm0, %v2218_v47 }
 0x160   :  { %1705 = vmatmul.msk.f32.gmra.mxu1 %vm119_vm0, %v98_v5  ;;  %1737 = vmatmul.msk.f32.gmra.mxu2 %vm119_vm0, %v98_v5 }
 0x164   :  { %v2318_v10 = vpop.f32.mrf.mxu0 }
 0x165   :  { %v2320_v11 = vpop.f32.mrf.mxu1 }
 0x167   :  { %1674 = vmatmul.msk.f32.gmra.mxu3 %vm119_vm0, %v99_v7 }
 0x168   :  { %1706 = vmatmul.msk.f32.gmra.mxu1 %vm119_vm0, %v99_v7  ;;  %1738 = vmatmul.msk.f32.gmra.mxu2 %vm119_vm0, %v99_v7 }
 0x16a   :  { %v2370_v40 = vpop.f32.mrf.mxu3 }
 0x16b   :  { %v2325_v13 = vpop.f32.mrf.mxu2 }
 0x16c   :  { %v2327_v14 = vpop.f32.mrf.mxu0 }
 0x16d   :  { %v2329_v15 = vpop.f32.mrf.mxu1 }
 0x16f   :  { %1675 = vmatmul.msk.f32.gmra.mxu3 %vm119_vm0, %v100_v9 }
 0x170   :  { %1707 = vmatmul.msk.f32.gmra.mxu1 %vm119_vm0, %v100_v9  ;;  %1739 = vmatmul.msk.f32.gmra.mxu2 %vm119_vm0, %v100_v9 }
 0x172   :  { %v2392_v56 = vpop.f32.mrf.mxu3 }
 0x173   :  { %v2334_v16 = vpop.f32.mrf.mxu2 }
 0x174   :  { %v2336_v17 = vpop.f32.mrf.mxu0 }
 0x175   :  { %v2338_v19 = vpop.f32.mrf.mxu1 }
 0x176   :  { %v405_v5 = vadd.f32 %v2368_v36, %v2338_v19  ;;  %v402_v19 = vadd.f32 %v2368_v36, %v2329_v15 }
 0x177   :  { %1676 = vmatmul.msk.f32.gmra.mxu3 %vm119_vm0, %v101_v12 }
 0x178   :  { %1708 = vmatmul.msk.f32.gmra.mxu1 %vm119_vm0, %v101_v12  ;;  %1740 = vmatmul.msk.f32.gmra.mxu2 %vm119_vm0, %v101_v12 }
 0x17b   :  { %v2343_v20 = vpop.f32.mrf.mxu2 }
 0x17c   :  { %v2345_v21 = vpop.f32.mrf.mxu0  ;;  %v546_v7 = vadd.f32 %v2380_v44, %v2343_v20 }
 0x17d   :  { %v407_v22 = vpop.f32.mrf.mxu1 }
 0x17e   :  { %v408_v58 = vadd.f32 %v2368_v36, %v407_v22 }
 0x17f   :  { %1677 = vmatmul.msk.f32.gmra.mxu3 %vm119_vm0, %v102_v18 }
 0x180   :  { %1709 = vmatmul.msk.f32.gmra.mxu1 %vm119_vm0, %v102_v18  ;;  %1741 = vmatmul.msk.f32.gmra.mxu2 %vm119_vm0, %v102_v18  ;;  %v543_v18 = vadd.f32 %v2380_v44, %v2334_v16  ;;  %v399_v16 = vadd.f32 %v2368_v36, %v2320_v11 }
 0x183   :  { %v548_v24 = vpop.f32.mrf.mxu2 }
 0x184   :  { %v2350_v25 = vpop.f32.mrf.mxu0  ;;  %v549_v60 = vadd.f32 %v2380_v44, %v548_v24  ;;  %v540_v24 = vadd.f32 %v2380_v44, %v2325_v13  ;;  %v474_v13 = vpack.c.bf16 %v402_v19, %v399_v16 }
 0x185   :  { %v410_v26 = vpop.f32.mrf.mxu1 }
 0x186   :  { %v411_v48 = vadd.f32 %v2368_v36, %v410_v26  ;;  %v616_v22 = vpack.c.bf16 %v549_v60, %v546_v7  ;;  %v2414_v26 = vpop.f32.mrf.mxu3  ;;  %v689_v15 = vsel %vm627_vm1, %v474_v13, 0  ;;  %v2467_v7 = vld [vmem:[%s3050_s4] ss:$0 sm:$0xff]  ;;  %s2027_s4 = smov [#allocation2]  }
 0x187   :  { %1678 = vmatmul.msk.f32.gmra.mxu3 %vm119_vm0, %v103_v23  ;;  %s1636_s10 = sshll.u32 %s2027_s4, 4  ;;  %s1637_s10 = int_to_ptr.vmem [resolvable:$true] %s1636_s10 }
 0x188   :  { %1710 = vmatmul.msk.f32.gmra.mxu1 %vm119_vm0, %v103_v23  ;;  %1742 = vmatmul.msk.f32.gmra.mxu2 %vm119_vm0, %v103_v23  ;;  %v475_v23 = vpack.c.bf16 %v408_v58, %v405_v5  ;;  %v378_v58 = vadd.f32 %v2368_v36, %v2327_v14 }
 0x18a   :  { %v692_v20 = vsel %vm627_vm1, %v475_v23, 0  ;;  %v237_v23 = vadd.f32 %v2467_v7, %v2269_v61 }
 0x18b   :  { %v551_v28 = vpop.f32.mrf.mxu2 }
 0x18c   :  { %v2355_v29 = vpop.f32.mrf.mxu0  ;;  %v552_v57 = vadd.f32 %v2380_v44, %v551_v28 }
 0x18d   :  { %v413_v30 = vpop.f32.mrf.mxu1 }
 0x18e   :  { %v414_v45 = vadd.f32 %v2368_v36, %v413_v30 }
 0x18f   :  { %1679 = vmatmul.msk.f32.gmra.mxu3 %vm119_vm0, %v104_v27 }
 0x190   :  { %1711 = vmatmul.msk.f32.gmra.mxu1 %vm119_vm0, %v104_v27  ;;  %1743 = vmatmul.msk.f32.gmra.mxu2 %vm119_vm0, %v104_v27  ;;  %v476_v55 = vpack.c.bf16 %v414_v45, %v411_v48  ;;  %v615_v27 = vpack.c.bf16 %v543_v18, %v540_v24  ;;  %v387_v45 = vadd.f32 %v2368_v36, %v2350_v25 }
 0x192   :  { %v695_v62 = vsel %vm627_vm1, %v476_v55, 0 }
 0x193   :  { %v554_v32 = vpop.f32.mrf.mxu2 }
 0x194   :  { %v2360_v33 = vpop.f32.mrf.mxu0  ;;  %v555_v53 = vadd.f32 %v2380_v44, %v554_v32 }
 0x195   :  { %v416_v34 = vpop.f32.mrf.mxu1 }
 0x196   :  { %v417_v41 = vadd.f32 %v2368_v36, %v416_v34  ;;  %v617_v0 = vpack.c.bf16 %v555_v53, %v552_v57  ;;  %v381_v53 = vadd.f32 %v2368_v36, %v2336_v17 }
 0x197   :  { %1680 = vmatmul.msk.f32.gmra.mxu3 %vm119_vm0, %v105_v31 }
 0x198   :  { %1712 = vmatmul.msk.f32.gmra.mxu1 %vm119_vm0, %v105_v31  ;;  %1744 = vmatmul.msk.f32.gmra.mxu2 %vm119_vm0, %v105_v31 }
 0x19b   :  { %v557_v35 = vpop.f32.mrf.mxu2 }
 0x19c   :  { %v395_v37 = vpop.f32.mrf.mxu0  ;;  %v558_v49 = vadd.f32 %v2380_v44, %v557_v35  ;;  %v2427_v35 = vpop.f32.mrf.mxu3 }
 0x19d   :  { %v419_v39 = vpop.f32.mrf.mxu1  ;;  %v396_v32 = vadd.f32 %v2368_v36, %v395_v37 }
 0x19e   :  { %v420_v42 = vadd.f32 %v2368_v36, %v419_v39 }
 0x19f   :  { %1681 = vmatmul.msk.f32.gmra.mxu3 %vm119_vm0, %v106_v38 }
 0x1a0   :  { %1713 = vmatmul.msk.f32.gmra.mxu1 %vm119_vm0, %v106_v38  ;;  %1745 = vmatmul.msk.f32.gmra.mxu2 %vm119_vm0, %v106_v38  ;;  %v477_v43 = vpack.c.bf16 %v420_v42, %v417_v41  ;;  %v393_v38 = vadd.f32 %v2368_v36, %v2360_v33  ;;  %v390_v42 = vadd.f32 %v2368_v36, %v2355_v29 }
 0x1a2   :  { %v698_v46 = vsel %vm627_vm1, %v477_v43, 0  ;;  %v473_v11 = vpack.c.bf16 %v396_v32, %v393_v38  ;;  %v472_v33 = vpack.c.bf16 %v390_v42, %v387_v45 }
 0x1a3   :  { %v560_v47 = vpop.f32.mrf.mxu2  ;;  %724 = vmatpush.bf16.xpose.msrb.mxu3 %v698_v46 }
 0x1a4   :  { %v561_v50 = vadd.f32 %v2380_v44, %v560_v47  ;;  %v2387_v51 = vpop.f32.mrf.mxu0  ;;  %v686_v43 = vsel %vm627_vm1, %v473_v11, 0  ;;  %v2442_v48 = vpop.f32.mrf.mxu3 }
 0x1a5   :  { %v2389_v52 = vpop.f32.mrf.mxu1 }
 0x1a6   :  { %v618_v54 = vpack.c.bf16 %v561_v50, %v558_v49  ;;  %v384_v49 = vadd.f32 %v2368_v36, %v2345_v21  ;;  %v683_v50 = vsel %vm627_vm1, %v472_v33, 0  ;;  %v516_v33 = vadd.f32 %v2380_v44, %v2387_v51 }
 0x1a8   :  { %1318 = vmatpush.bf16.msrb.mxu1 %v618_v54  ;;  %v471_v25 = vpack.c.bf16 %v384_v49, %v381_v53 }
 0x1aa   :  { %v680_v60 = vsel %vm627_vm1, %v471_v25, 0 }
 0x1ab   :  { %v2398_v2 = vpop.f32.mrf.mxu2  ;;  %725 = vmatpush.bf16.xpose.msrb.mxu3 %v695_v62  ;;  %v375_v62 = vadd.f32 %v2368_v36, %v2318_v10 }
 0x1ac   :  { %1319 = vmatpush.bf16.msrb.mxu1 %v617_v0  ;;  %v2404_v9 = vpop.f32.mrf.mxu0  ;;  %v2453_v57 = vpop.f32.mrf.mxu3 }
 0x1ad   :  { %v2406_v12 = vpop.f32.mrf.mxu1  ;;  %v470_v17 = vpack.c.bf16 %v378_v58, %v375_v62  ;;  %v519_v45 = vadd.f32 %v2380_v44, %v2404_v9 }
 0x1af   :  { %v677_v14 = vsel %vm627_vm1, %v470_v17, 0 }
 0x1b0   :  { %1320 = vmatpush.bf16.msrb.mxu1 %v616_v22 }
 0x1b3   :  { %v2417_v28 = vpop.f32.mrf.mxu2  ;;  %726 = vmatpush.bf16.xpose.msrb.mxu3 %v692_v20 }
 0x1b4   :  { %1321 = vmatpush.bf16.msrb.mxu1 %v615_v27  ;;  %v521_v30 = vpop.f32.mrf.mxu0  ;;  %v2469_v18 = vpop.f32.mrf.mxu3  ;;  %v234_v27 = vadd.f32 %v2467_v7, %v2262_v59 }
 0x1b5   :  { %v2421_v31 = vpop.f32.mrf.mxu1  ;;  %v522_v59 = vadd.f32 %v2380_v44, %v521_v30  ;;  %v240_v30 = vadd.f32 %v2467_v7, %v2276_v63 }
 0x1b6   :  { %v2483_v32 = vpack.c.bf16 %v237_v23, %v234_v27  ;;  %v252_v27 = vadd.f32 %v2467_v7, %v2304_v6 }
 0x1bb   :  { %v2425_v34 = vpop.f32.mrf.mxu2  ;;  %727 = vmatpush.bf16.xpose.msrb.mxu3 %v689_v15 }
 0x1bc   :  { %v524_v39 = vpop.f32.mrf.mxu0  ;;  %v2491_v42 = vpop.f32.mrf.mxu3 }
 0x1bd   :  { %v2431_v41 = vpop.f32.mrf.mxu1  ;;  %v525_v61 = vadd.f32 %v2380_v44, %v524_v39  ;;  %v611_v39 = vpack.c.bf16 %v519_v45, %v516_v33 }
 0x1c3   :  { %v2436_v37 = vpop.f32.mrf.mxu2  ;;  %728 = vmatpush.bf16.xpose.msrb.mxu3 %v686_v43 }
 0x1c4   :  { %v527_v46 = vpop.f32.mrf.mxu0 }
 0x1c5   :  { %v2440_v47 = vpop.f32.mrf.mxu1  ;;  %v528_v15 = vadd.f32 %v2380_v44, %v527_v46  ;;  %v612_v46 = vpack.c.bf16 %v525_v61, %v522_v59  ;;  %v258_v59 = vadd.f32 %v2467_v7, %v2370_v40 }
 0x1cb   :  { %v2447_v29 = vpop.f32.mrf.mxu2  ;;  %729 = vmatpush.bf16.xpose.msrb.mxu3 %v683_v50  ;;  %v243_v50 = vadd.f32 %v2467_v7, %v2283_v1  ;;  %v249_v1 = vadd.f32 %v2467_v7, %v2297_v4 }
 0x1cc   :  { %v530_v54 = vpop.f32.mrf.mxu0 }
 0x1cd   :  { %v2451_v55 = vpop.f32.mrf.mxu1  ;;  %v531_v16 = vadd.f32 %v2380_v44, %v530_v54  ;;  %v2508_v54 = vpop.f32.mrf.mxu3  ;;  %v2510_v9 = vpack.c.bf16 %v243_v50, %v240_v30 }
 0x1cf   :  { %v613_v11 = vpack.c.bf16 %v531_v16, %v528_v15 }
 0x1d3   :  { %v2458_v21 = vpop.f32.mrf.mxu2  ;;  %730 = vmatpush.bf16.xpose.msrb.mxu3 %v680_v60 }
 0x1d4   :  { %v533_v0 = vpop.f32.mrf.mxu0 }
 0x1d5   :  { %v2462_v5 = vpop.f32.mrf.mxu1  ;;  %v534_v24 = vadd.f32 %v2380_v44, %v533_v0  ;;  %v2514_v58 = vpop.f32.mrf.mxu3  ;;  %v246_v0 = vadd.f32 %v2467_v7, %v2290_v3 }
 0x1d7   :  { %v2520_v63 = vpack.c.bf16 %v249_v1, %v246_v0 }
 0x1db   :  { %v2472_v22 = vpop.f32.mrf.mxu2  ;;  %731 = vmatpush.bf16.xpose.msrb.mxu3 %v677_v14 }
 0x1dc   :  { %v536_v10 = vpop.f32.mrf.mxu0 }
 0x1dd   :  { %v2477_v19 = vpop.f32.mrf.mxu1  ;;  %v537_v20 = vadd.f32 %v2380_v44, %v536_v10  ;;  %v2522_v17 = vpop.f32.mrf.mxu3 }
 0x1df   :  { %v614_v13 = vpack.c.bf16 %v537_v20, %v534_v24  ;;  %v255_v24 = vadd.f32 %v2467_v7, %v2311_v8 }
 0x1e1   :  { %1322 = vmatpush.bf16.msrb.mxu1 %v614_v13  ;;  %v2532_v3 = vpack.c.bf16 %v255_v24, %v252_v27 }
 0x1e2   :  { %1746 = vmatmul.msk.bf16.vlgmr.msrb.gmra.mxu3 %vm627_vm1, %v2483_v32 }
 0x1e3   :  { %v2489_v38 = vpop.f32.mrf.mxu2 }
 0x1e5   :  { %v2494_v43 = vpop.f32.mrf.mxu1  ;;  %1323 = vmatpush.bf16.msrb.mxu1 %v613_v11  ;;  %v2528_v20 = vpop.f32.mrf.mxu3  ;;  %v261_v11 = vadd.f32 %v2467_v7, %v2392_v56 }
 0x1e9   :  { %1324 = vmatpush.bf16.msrb.mxu1 %v612_v46  ;;  %v2544_v46 = vpack.c.bf16 %v261_v11, %v258_v59 }
 0x1eb   :  { %v2500_v49 = vpop.f32.mrf.mxu2 }
 0x1ed   :  { %v2504_v53 = vpop.f32.mrf.mxu1  ;;  %1325 = vmatpush.bf16.msrb.mxu1 %v611_v39  ;;  %v2536_v15 = vpop.f32.mrf.mxu3 }
 0x1f2   :  { %1747 = vmatmul.msk.bf16.gmra.mxu3 %vm627_vm1, %v2510_v9 }
 0x1f3   :  { %v590_v51 = vpop.f32.mrf.mxu2 }
 0x1f5   :  { %v452_v25 = vpop.f32.mrf.mxu1  ;;  %v2546_v33 = vpop.f32.mrf.mxu3 }
 0x1fb   :  { %v593_v60 = vpop.f32.mrf.mxu2 }
 0x1fd   :  { %v455_v62 = vpop.f32.mrf.mxu1 }
 0x202   :  { %1748 = vmatmul.msk.bf16.gmra.mxu3 %vm627_vm1, %v2520_v63 }
 0x203   :  { %v596_v14 = vpop.f32.mrf.mxu2 }
 0x204   :  { %v597_v59 = vadd.f32 %v2380_v44, %v596_v14 }
 0x205   :  { %v458_v23 = vpop.f32.mrf.mxu1 }
 0x206   :  { %v459_v40 = vadd.f32 %v2368_v36, %v458_v23 }
 0x20b   :  { %v599_v10 = vpop.f32.mrf.mxu2 }
 0x20c   :  { %v600_v11 = vadd.f32 %v2380_v44, %v599_v10  ;;  %v264_v10 = vadd.f32 %v2467_v7, %v2414_v26 }
 0x20d   :  { %v461_v4 = vpop.f32.mrf.mxu1 }
 0x20e   :  { %v462_v50 = vadd.f32 %v2368_v36, %v461_v4  ;;  %v2557_v4 = vpop.f32.mrf.mxu3 }
 0x212   :  { %1749 = vmatmul.msk.bf16.gmra.mxu3 %vm627_vm1, %v2532_v3 }
 0x213   :  { %v602_v16 = vpop.f32.mrf.mxu2 }
 0x214   :  { %v603_v24 = vadd.f32 %v2380_v44, %v602_v16  ;;  %v453_v16 = vadd.f32 %v2368_v36, %v452_v25  ;;  %v450_v25 = vadd.f32 %v2368_v36, %v2504_v53 }
 0x215   :  { %v464_v13 = vpop.f32.mrf.mxu1 }
 0x216   :  { %v465_v45 = vadd.f32 %v2368_v36, %v464_v13  ;;  %v484_v13 = vpack.c.bf16 %v462_v50, %v459_v40  ;;  %v625_v23 = vpack.c.bf16 %v603_v24, %v600_v11 }
 0x21b   :  { %v605_v61 = vpop.f32.mrf.mxu2 }
 0x21c   :  { %v606_v1 = vadd.f32 %v2380_v44, %v605_v61  ;;  %v267_v61 = vadd.f32 %v2467_v7, %v2427_v35  ;;  %v585_v35 = vadd.f32 %v2380_v44, %v2489_v38  ;;  %v579_v38 = vadd.f32 %v2380_v44, %v2458_v21 }
 0x21d   :  { %v467_v8 = vpop.f32.mrf.mxu1  ;;  %v570_v21 = vadd.f32 %v2380_v44, %v2425_v34  ;;  %v438_v34 = vadd.f32 %v2368_v36, %v2451_v55  ;;  %v279_v55 = vadd.f32 %v2467_v7, %v2491_v42  ;;  %v423_v42 = vadd.f32 %v2368_v36, %v2389_v52 }
 0x21e   :  { %v468_v6 = vadd.f32 %v2368_v36, %v467_v8  ;;  %v456_v8 = vadd.f32 %v2368_v36, %v455_v62  ;;  %v2569_v14 = vpack.c.bf16 %v267_v61, %v264_v10  ;;  %v429_v61 = vadd.f32 %v2368_v36, %v2421_v31 }
 0x21f   :  { %v426_v10 = vadd.f32 %v2368_v36, %v2406_v12  ;;  %v282_v12 = vadd.f32 %v2467_v7, %v2508_v54  ;;  %v288_v52 = vadd.f32 %v2467_v7, %v2522_v17 }
 0x220   :  { %v485_v39 = vpack.c.bf16 %v468_v6, %v465_v45  ;;  %v719_v45 = vsel %vm627_vm1, %v484_v13, 0  ;;  %v594_v6 = vadd.f32 %v2380_v44, %v593_v60  ;;  %v483_v50 = vpack.c.bf16 %v456_v8, %v453_v16 }
 0x221   :  { %v582_v60 = vadd.f32 %v2380_v44, %v2472_v22  ;;  %v444_v22 = vadd.f32 %v2368_v36, %v2477_v19  ;;  %v567_v19 = vadd.f32 %v2380_v44, %v2417_v28  ;;  %v435_v28 = vadd.f32 %v2368_v36, %v2440_v47 }
 0x222   :  { %1750 = vmatmul.msk.bf16.gmra.mxu3 %vm627_vm1, %v2544_v46  ;;  %v722_v56 = vsel %vm627_vm1, %v485_v39, 0  ;;  %v591_v39 = vadd.f32 %v2380_v44, %v590_v51  ;;  %v624_v62 = vpack.c.bf16 %v597_v59, %v594_v6  ;;  %v716_v26 = vsel %vm627_vm1, %v483_v50, 0 }
 0x223   :  { %v608_v30 = vpop.f32.mrf.mxu2  ;;  %813 = vmatpush.bf16.xpose.msrb.mxu0 %v722_v56  ;;  %v588_v56 = vadd.f32 %v2380_v44, %v2500_v49  ;;  %v447_v49 = vadd.f32 %v2368_v36, %v2494_v43  ;;  %v622_v53 = vpack.c.bf16 %v585_v35, %v582_v60  ;;  %v273_v43 = vadd.f32 %v2467_v7, %v2453_v57 }
 0x224   :  { %v609_v0 = vadd.f32 %v2380_v44, %v608_v30  ;;  %v2582_v30 = vpop.f32.mrf.mxu3  ;;  %v564_v57 = vadd.f32 %v2380_v44, %v2398_v2  ;;  %v276_v16 = vadd.f32 %v2467_v7, %v2469_v18  ;;  %v285_v18 = vadd.f32 %v2467_v7, %v2514_v58 }
 0x225   :  { %v623_v51 = vpack.c.bf16 %v591_v39, %v588_v56  ;;  %v482_v40 = vpack.c.bf16 %v450_v25, %v447_v49  ;;  %v297_v58 = vadd.f32 %v2467_v7, %v2546_v33 }
 0x226   :  { %v626_v27 = vpack.c.bf16 %v609_v0, %v606_v1  ;;  %v576_v1 = vadd.f32 %v2380_v44, %v2447_v29  ;;  %v573_v0 = vadd.f32 %v2380_v44, %v2436_v37  ;;  %v441_v29 = vadd.f32 %v2368_v36, %v2462_v5 }
 0x227   :  { %v713_v24 = vsel %vm627_vm1, %v482_v40, 0  ;;  %v270_v37 = vadd.f32 %v2467_v7, %v2442_v48  ;;  %v619_v5 = vpack.c.bf16 %v567_v19, %v564_v57  ;;  %v432_v44 = vadd.f32 %v2368_v36, %v2431_v41 }
 0x228   :  { %1407 = vmatpush.bf16.msrb.mxu2 %v626_v27  ;;  %v621_v27 = vpack.c.bf16 %v579_v38, %v576_v1  ;;  %v620_v11 = vpack.c.bf16 %v573_v0, %v570_v21  ;;  %v481_v8 = vpack.c.bf16 %v444_v22, %v441_v29  ;;  %v336_v47 = vpack.c.bf16 %v279_v55, %v276_v16 }
 0x229   :  { %v2605_v59 = vpack.c.bf16 %v273_v43, %v270_v37  ;;  %v479_v6 = vpack.c.bf16 %v432_v44, %v429_v61  ;;  %v337_v56 = vpack.c.bf16 %v285_v18, %v282_v12  ;;  %v291_v36 = vadd.f32 %v2467_v7, %v2528_v20 }
 0x22a   :  { %v710_v48 = vsel %vm627_vm1, %v481_v8, 0  ;;  %v303_v20 = vadd.f32 %v2467_v7, %v2582_v30 }
 0x22b   :  { %814 = vmatpush.bf16.xpose.msrb.mxu0 %v719_v45  ;;  %v480_v45 = vpack.c.bf16 %v438_v34, %v435_v28  ;;  %v704_v41 = vsel %vm627_vm1, %v479_v6, 0  ;;  %v338_v25 = vpack.c.bf16 %v291_v36, %v288_v52 }
 0x22c   :  { %1408 = vmatpush.bf16.msrb.mxu2 %v625_v23  ;;  %v305_v13 = vpop.f32.mrf.mxu3 }
 0x22d   :  { %v707_v2 = vsel %vm627_vm1, %v480_v45, 0 }
 0x230   :  { %1409 = vmatpush.bf16.msrb.mxu2 %v624_v62  ;;  %v478_v62 = vpack.c.bf16 %v426_v10, %v423_v42 }
 0x232   :  { %1751 = vmatmul.msk.bf16.gmra.mxu3 %vm627_vm1, %v2569_v14  ;;  %v701_v31 = vsel %vm627_vm1, %v478_v62, 0 }
 0x233   :  { %815 = vmatpush.bf16.xpose.msrb.mxu0 %v716_v26 }
 0x234   :  { %1410 = vmatpush.bf16.msrb.mxu2 %v623_v51  ;;  %v308_v23 = vpop.f32.mrf.mxu3 }
 0x235   :  { %v309_v33 = vadd.f32 %v2467_v7, %v308_v23 }
 0x238   :  { %1411 = vmatpush.bf16.msrb.mxu2 %v622_v53 }
 0x23b   :  { %816 = vmatpush.bf16.xpose.msrb.mxu0 %v713_v24 }
 0x23c   :  { %1412 = vmatpush.bf16.msrb.mxu2 %v621_v27  ;;  %v311_v39 = vpop.f32.mrf.mxu3 }
 0x240   :  { %1413 = vmatpush.bf16.msrb.mxu2 %v620_v11 }
 0x242   :  { %1752 = vmatmul.msk.bf16.gmra.mxu3 %vm627_vm1, %v2605_v59 }
 0x243   :  { %817 = vmatpush.bf16.xpose.msrb.mxu0 %v710_v48 }
 0x244   :  { %1414 = vmatpush.bf16.msrb.mxu2 %v619_v5  ;;  %v314_v50 = vpop.f32.mrf.mxu3 }
 0x245   :  { %v315_v30 = vadd.f32 %v2467_v7, %v314_v50 }
 0x24b   :  { %818 = vmatpush.bf16.xpose.msrb.mxu0 %v707_v2 }
 0x24c   :  { %v317_v35 = vpop.f32.mrf.mxu3 }
 0x24d   :  { %v318_v22 = vadd.f32 %v2467_v7, %v317_v35 }
 0x252   :  { %1753 = vmatmul.msk.bf16.gmra.mxu3 %vm627_vm1, %v336_v47 }
 0x253   :  { %819 = vmatpush.bf16.xpose.msrb.mxu0 %v704_v41 }
 0x254   :  { %v320_v26 = vpop.f32.mrf.mxu3 }
 0x255   :  { %v321_v0 = vadd.f32 %v2467_v7, %v320_v26 }
 0x25b   :  { %820 = vmatpush.bf16.xpose.msrb.mxu0 %v701_v31 }
 0x25c   :  { %v323_v54 = vpop.f32.mrf.mxu3 }
 0x25d   :  { %v324_v43 = vadd.f32 %v2467_v7, %v323_v54 }
 0x262   :  { %1754 = vmatmul.msk.bf16.gmra.mxu3 %vm627_vm1, %v337_v56  ;;  %1762 = vmatmul.msk.bf16.vlgmr.msrb.gmra.mxu0 %vm627_vm1, %v2483_v32  ;;  %v294_v32 = vadd.f32 %v2467_v7, %v2536_v15 }
 0x264   :  { %v339_v51 = vpack.c.bf16 %v297_v58, %v294_v32  ;;  %v326_v17 = vpop.f32.mrf.mxu3 }
 0x26c   :  { %v2655_v60 = vpop.f32.mrf.mxu3 }
 0x272   :  { %1755 = vmatmul.msk.bf16.gmra.mxu3 %vm627_vm1, %v338_v25  ;;  %1763 = vmatmul.msk.bf16.gmra.mxu0 %vm627_vm1, %v2510_v9  ;;  %v300_v9 = vadd.f32 %v2467_v7, %v2557_v4 }
 0x274   :  { %v340_v49 = vpack.c.bf16 %v303_v20, %v300_v9  ;;  %v2662_v15 = vpop.f32.mrf.mxu3 }
 0x27c   :  { %v2666_v53 = vpop.f32.mrf.mxu3 }
 0x282   :  { %1756 = vmatmul.msk.bf16.gmra.mxu3 %vm627_vm1, %v339_v51  ;;  %1764 = vmatmul.msk.bf16.gmra.mxu0 %vm627_vm1, %v2520_v63  ;;  %v306_v63 = vadd.f32 %v2467_v7, %v305_v13 }
 0x284   :  { %v341_v38 = vpack.c.bf16 %v309_v33, %v306_v63  ;;  %v2671_v4 = vpop.f32.mrf.mxu3 }
 0x28c   :  { %v2678_v1 = vpop.f32.mrf.mxu3 }
 0x292   :  { %1757 = vmatmul.msk.bf16.gmra.mxu3 %vm627_vm1, %v340_v49  ;;  %1765 = vmatmul.msk.bf16.gmra.mxu0 %vm627_vm1, %v2532_v3  ;;  %v312_v3 = vadd.f32 %v2467_v7, %v311_v39 }
 0x294   :  { %v342_v40 = vpack.c.bf16 %v315_v30, %v312_v3  ;;  %v2682_v24 = vpop.f32.mrf.mxu3 }
 0x29c   :  { %v2690_v27 = vpop.f32.mrf.mxu3 }
 0x2a2   :  { %1758 = vmatmul.msk.bf16.gmra.mxu3 %vm627_vm1, %v341_v38  ;;  %1766 = vmatmul.msk.bf16.gmra.mxu0 %vm627_vm1, %v2544_v46  ;;  %v2684_v46 = vpack.c.bf16 %v321_v0, %v318_v22 }
 0x2a4   :  { %v2696_v29 = vpop.f32.mrf.mxu3 }
 0x2b2   :  { %1759 = vmatmul.msk.bf16.gmra.mxu3 %vm627_vm1, %v342_v40  ;;  %1767 = vmatmul.msk.bf16.gmra.mxu0 %vm627_vm1, %v2569_v14  ;;  %v327_v14 = vadd.f32 %v2467_v7, %v326_v17 }
 0x2b4   :  { %v2694_v21 = vpack.c.bf16 %v327_v14, %v324_v43 }
 0x2c2   :  { %1760 = vmatmul.msk.bf16.gmra.mxu3 %vm627_vm1, %v2684_v46  ;;  %1768 = vmatmul.msk.bf16.gmra.mxu0 %vm627_vm1, %v2605_v59  ;;  %v2715_v59 = vpop.f32.mrf.mxu3 }
 0x2ca   :  { %v2721_v48 = vpop.f32.mrf.mxu3 }
 0x2d2   :  { %1761 = vmatmul.msk.bf16.gmra.mxu3 %vm627_vm1, %v2694_v21  ;;  %1769 = vmatmul.msk.bf16.gmra.mxu0 %vm627_vm1, %v336_v47  ;;  %v2728_v45 = vpop.f32.mrf.mxu3 }
 0x2da   :  { %v2738_v61 = vpop.f32.mrf.mxu3 }
 0x2df   :  { %v2701_v37 = vpop.f32.mrf.mxu0 }
 0x2e0   :  { %v902_v19 = vmax.f32 %v2655_v60, %v2701_v37 }
 0x2e2   :  { %903 = vmax.xlane.f32.xlu2 %v902_v19  ;;  %1770 = vmatmul.msk.bf16.gmra.mxu0 %vm627_vm1, %v337_v56  ;;  %v2745_v47 = vpop.f32.mrf.mxu3 }
 0x2e7   :  { %v2706_v13 = vpop.f32.mrf.mxu0 }
 0x2e8   :  { %v905_v7 = vmax.f32 %v2662_v15, %v2706_v13 }
 0x2ea   :  { %906 = vmax.xlane.f32.xlu2 %v905_v7  ;;  %v2752_v41 = vpop.f32.mrf.mxu3 }
 0x2ef   :  { %v2710_v11 = vpop.f32.mrf.mxu0 }
 0x2f0   :  { %v908_v8 = vmax.f32 %v2666_v53, %v2710_v11 }
 0x2f2   :  { %909 = vmax.xlane.f32.xlu2 %v908_v8  ;;  %1771 = vmatmul.msk.bf16.gmra.mxu0 %vm627_vm1, %v338_v25  ;;  %v2758_v31 = vpop.f32.mrf.mxu3 }
 0x2f7   :  { %v2717_v57 = vpop.f32.mrf.mxu0 }
 0x2f8   :  { %v911_v34 = vmax.f32 %v2671_v4, %v2717_v57 }
 0x2fa   :  { %912 = vmax.xlane.f32.xlu2 %v911_v34  ;;  %v2769_v35 = vpop.f32.mrf.mxu3 }
 0x2ff   :  { %v2723_v5 = vpop.f32.mrf.mxu0 }
 0x300   :  { %v914_v28 = vmax.f32 %v2678_v1, %v2723_v5 }
 0x302   :  { %915 = vmax.xlane.f32.xlu2 %v914_v28  ;;  %1772 = vmatmul.msk.bf16.gmra.mxu0 %vm627_vm1, %v339_v51  ;;  %v2777_v25 = vpop.f32.mrf.mxu3 }
 0x307   :  { %v2730_v23 = vpop.f32.mrf.mxu0 }
 0x308   :  { %v917_v44 = vmax.f32 %v2682_v24, %v2730_v23 }
 0x30a   :  { %918 = vmax.xlane.f32.xlu2 %v917_v44  ;;  %v2783_v58 = vpop.f32.mrf.mxu3 }
 0x30f   :  { %v2734_v2 = vpop.f32.mrf.mxu0 }
 0x310   :  { %v920_v55 = vmax.f32 %v2690_v27, %v2734_v2 }
 0x312   :  { %921 = vmax.xlane.f32.xlu2 %v920_v55  ;;  %1773 = vmatmul.msk.bf16.gmra.mxu0 %vm627_vm1, %v340_v49  ;;  %v2793_v49 = vpop.f32.mrf.mxu3 }
 0x317   :  { %v2741_v16 = vpop.f32.mrf.mxu0 }
 0x318   :  { %v923_v6 = vmax.f32 %v2696_v29, %v2741_v16 }
 0x31a   :  { %924 = vmax.xlane.f32.xlu2 %v923_v6 }
 0x31f   :  { %v2747_v10 = vpop.f32.mrf.mxu0 }
 0x320   :  { %v926_v39 = vmax.f32 %v2715_v59, %v2747_v10 }
 0x322   :  { %927 = vmax.xlane.f32.xlu0 %v926_v39  ;;  %1774 = vmatmul.msk.bf16.gmra.mxu0 %vm627_vm1, %v341_v38 }
 0x327   :  { %v2754_v42 = vpop.f32.mrf.mxu0 }
 0x328   :  { %v929_v62 = vmax.f32 %v2721_v48, %v2754_v42 }
 0x32a   :  { %930 = vmax.xlane.f32.xlu1 %v929_v62 }
 0x32f   :  { %v2760_v18 = vpop.f32.mrf.mxu0 }
 0x330   :  { %v932_v50 = vmax.f32 %v2728_v45, %v2760_v18 }
 0x332   :  { %933 = vmax.xlane.f32.xlu2 %v932_v50  ;;  %1775 = vmatmul.msk.bf16.gmra.mxu0 %vm627_vm1, %v342_v40 }
 0x337   :  { %v2765_v12 = vpop.f32.mrf.mxu0 }
 0x338   :  { %v935_v56 = vmax.f32 %v2738_v61, %v2765_v12 }
 0x33a   :  { %936 = vmax.xlane.f32.xlu2 %v935_v56 }
 0x33f   :  { %v2771_v36 = vpop.f32.mrf.mxu0 }
 0x340   :  { %v938_v52 = vmax.f32 %v2745_v47, %v2771_v36 }
 0x342   :  { %939 = vmax.xlane.f32.xlu2 %v938_v52  ;;  %1776 = vmatmul.msk.bf16.gmra.mxu0 %vm627_vm1, %v2684_v46 }
 0x347   :  { %v2779_v26 = vpop.f32.mrf.mxu0 }
 0x348   :  { %v941_v54 = vmax.f32 %v2752_v41, %v2779_v26 }
 0x34a   :  { %942 = vmax.xlane.f32.xlu2 %v941_v54 }
 0x34f   :  { %v2785_v32 = vpop.f32.mrf.mxu0 }
 0x350   :  { %v944_v51 = vmax.f32 %v2758_v31, %v2785_v32 }
 0x352   :  { %1777 = vmatmul.msk.bf16.gmra.mxu0 %vm627_vm1, %v2694_v21  ;;  %945 = vmax.xlane.f32.xlu2 %v944_v51 }
 0x355   :  { %v904_v17 = vpop.xlane.xlu2 %903 }
 0x356   :  { %v998_v20 = vsub.f32 %v2655_v60, %v904_v17  ;;  %v999_v9 = vsub.f32 %v2701_v37, %v904_v17  ;;  %v2805_v37 = vpop.f32.mrf.mxu3 }
 0x357   :  { %v2795_v33 = vpop.f32.mrf.mxu0 }
 0x358   :  { %v1062_v63 = vmul.f32 1.442695, %v998_v20  ;;  %v1064_v38 = vmul.f32 1.442695, %v999_v9  ;;  %v947_v30 = vmax.f32 %v2769_v35, %v2795_v33 }
 0x35a   :  { %1809 = vpow2.f32 %v1062_v63  ;;  %948 = vmax.xlane.f32.xlu2 %v947_v30 }
 0x35b   :  { %1811 = vpow2.f32 %v1064_v38 }
 0x35d   :  { %v907_v3 = vpop.xlane.xlu2 %906 }
 0x35e   :  { %v1000_v40 = vsub.f32 %v2662_v15, %v907_v3  ;;  %v1001_v0 = vsub.f32 %v2706_v13, %v907_v3  ;;  %v2813_v50 = vpop.f32.mrf.mxu3 }
 0x35f   :  { %v2801_v60 = vpop.f32.mrf.mxu0 }
 0x360   :  { %v1810_v22 = vpop.eup %1809  ;;  %v1066_v46 = vmul.f32 1.442695, %v1000_v40  ;;  %v1068_v14 = vmul.f32 1.442695, %v1001_v0  ;;  %v950_v43 = vmax.f32 %v2777_v25, %v2801_v60 }
 0x361   :  { %v1812_v21 = vpop.eup %1811 }
 0x362   :  { %1813 = vpow2.f32 %v1066_v46  ;;  %951 = vmax.xlane.f32.xlu2 %v950_v43  ;;  %v1190_v19 = vadd.f32 %v1812_v21, %v1810_v22 }
 0x363   :  { %1815 = vpow2.f32 %v1068_v14 }
 0x364   :  { %1191 = vadd.xlane.f32.xlu1 %v1190_v19 }
 0x365   :  { %v910_v7 = vpop.xlane.xlu2 %909 }
 0x366   :  { %v1002_v15 = vsub.f32 %v2666_v53, %v910_v7  ;;  %v1003_v13 = vsub.f32 %v2710_v11, %v910_v7  ;;  %v2819_v38 = vpop.f32.mrf.mxu3 }
 0x367   :  { %v2809_v8 = vpop.f32.mrf.mxu0 }
 0x368   :  { %v1814_v34 = vpop.eup %1813  ;;  %v1070_v28 = vmul.f32 1.442695, %v1002_v15  ;;  %v1072_v44 = vmul.f32 1.442695, %v1003_v13  ;;  %v953_v55 = vmax.f32 %v2783_v58, %v2809_v8 }
 0x369   :  { %v1816_v6 = vpop.eup %1815  ;;  %v1286_v39 = vpack.c.bf16 %v1814_v34, %v1810_v22 }
 0x36a   :  { %1817 = vpow2.f32 %v1070_v28  ;;  %954 = vmax.xlane.f32.xlu2 %v953_v55  ;;  %v1287_v62 = vpack.c.bf16 %v1816_v6, %v1812_v21  ;;  %v1193_v20 = vadd.f32 %v1816_v6, %v1814_v34 }
 0x36b   :  { %1819 = vpow2.f32 %v1072_v44  ;;  %1326 = vmatmul.bf16.vlgmr.msrb.gmra.mxu1 %v1286_v39 }
 0x36c   :  { %1415 = vmatmul.bf16.vlgmr.msrb.gmra.mxu2 %v1287_v62 }
 0x36d   :  { %v913_v53 = vpop.xlane.xlu2 %912 }
 0x36e   :  { %v1004_v11 = vsub.f32 %v2671_v4, %v913_v53  ;;  %v1005_v56 = vsub.f32 %v2717_v57, %v913_v53  ;;  %v2829_v7 = vpop.f32.mrf.mxu3 }
 0x36f   :  { %v2817_v52 = vpop.f32.mrf.mxu0 }
 0x370   :  { %v1818_v54 = vpop.eup %1817  ;;  %v1074_v51 = vmul.f32 1.442695, %v1004_v11  ;;  %v1076_v17 = vmul.f32 1.442695, %v1005_v56  ;;  %v956_v46 = vmax.f32 %v2793_v49, %v2817_v52 }
 0x371   :  { %v1820_v9 = vpop.eup %1819 }
 0x372   :  { %1821 = vpow2.f32 %v1074_v51  ;;  %1194 = vadd.xlane.f32.xlu2 %v1193_v20  ;;  %v1196_v63 = vadd.f32 %v1820_v9, %v1818_v54 }
 0x373   :  { %1823 = vpow2.f32 %v1076_v17 }
 0x374   :  { %1197 = vadd.xlane.f32.xlu1 %v1196_v63 }
 0x375   :  { %v916_v30 = vpop.xlane.xlu2 %915 }
 0x376   :  { %v1006_v3 = vsub.f32 %v2678_v1, %v916_v30  ;;  %v1007_v4 = vsub.f32 %v2723_v5, %v916_v30  ;;  %v2838_v56 = vpop.f32.mrf.mxu3 }
 0x377   :  { %v2823_v57 = vpop.f32.mrf.mxu0 }
 0x378   :  { %v1822_v40 = vpop.eup %1821  ;;  %v1078_v0 = vmul.f32 1.442695, %v1006_v3  ;;  %v1080_v22 = vmul.f32 1.442695, %v1007_v4  ;;  %v959_v44 = vmax.f32 %v2805_v37, %v2823_v57 }
 0x379   :  { %v1824_v14 = vpop.eup %1823  ;;  %v1288_v43 = vpack.c.bf16 %v1822_v40, %v1818_v54 }
 0x37a   :  { %1825 = vpow2.f32 %v1078_v0  ;;  %957 = vmax.xlane.f32.xlu2 %v956_v46  ;;  %v1289_v21 = vpack.c.bf16 %v1824_v14, %v1820_v9  ;;  %v1199_v53 = vadd.f32 %v1824_v14, %v1822_v40 }
 0x37b   :  { %1827 = vpow2.f32 %v1080_v22  ;;  %1331 = vmatmul.bf16.gmra.mxu1 %v1288_v43 }
 0x37c   :  { %1420 = vmatmul.bf16.gmra.mxu2 %v1289_v21 }
 0x37d   :  { %v919_v19 = vpop.xlane.xlu2 %918 }
 0x37e   :  { %v1008_v1 = vsub.f32 %v2682_v24, %v919_v19  ;;  %v1009_v5 = vsub.f32 %v2730_v23, %v919_v19  ;;  %v2847_v22 = vpop.f32.mrf.mxu3 }
 0x37f   :  { %v2831_v15 = vpop.f32.mrf.mxu0 }
 0x380   :  { %v1826_v13 = vpop.eup %1825  ;;  %v1082_v34 = vmul.f32 1.442695, %v1008_v1  ;;  %v1084_v28 = vmul.f32 1.442695, %v1009_v5 }
 0x381   :  { %v1828_v55 = vpop.eup %1827 }
 0x382   :  { %1829 = vpow2.f32 %v1082_v34  ;;  %960 = vmax.xlane.f32.xlu2 %v959_v44  ;;  %v1202_v6 = vadd.f32 %v1828_v55, %v1826_v13 }
 0x383   :  { %1831 = vpow2.f32 %v1084_v28 }
 0x384   :  { %1203 = vadd.xlane.f32.xlu0 %v1202_v6 }
 0x385   :  { %v922_v39 = vpop.xlane.xlu2 %921 }
 0x386   :  { %v1010_v62 = vsub.f32 %v2690_v27, %v922_v39  ;;  %v1011_v54 = vsub.f32 %v2734_v2, %v922_v39  ;;  %v962_v2 = vmax.f32 %v2813_v50, %v2831_v15 }
 0x387   :  { %v2835_v24 = vpop.f32.mrf.mxu0 }
 0x388   :  { %v1830_v23 = vpop.eup %1829  ;;  %v1086_v9 = vmul.f32 1.442695, %v1010_v62  ;;  %v1088_v63 = vmul.f32 1.442695, %v1011_v54 }
 0x389   :  { %v1832_v11 = vpop.eup %1831  ;;  %v1290_v51 = vpack.c.bf16 %v1830_v23, %v1826_v13  ;;  %v965_v13 = vmax.f32 %v2819_v38, %v2835_v24 }
 0x38a   :  { %1200 = vadd.xlane.f32.xlu2 %v1199_v53  ;;  %v1291_v17 = vpack.c.bf16 %v1832_v11, %v1828_v55  ;;  %v1205_v20 = vadd.f32 %v1832_v11, %v1830_v23  ;;  %1833 = vpow2.f32 %v1086_v9 }
 0x38b   :  { %1336 = vmatmul.bf16.gmra.mxu1 %v1290_v51  ;;  %1835 = vpow2.f32 %v1088_v63 }
 0x38c   :  { %1425 = vmatmul.bf16.gmra.mxu2 %v1291_v17  ;;  %1206 = vadd.xlane.f32.xlu1 %v1205_v20 }
 0x38d   :  { %v925_v30 = vpop.xlane.xlu2 %924 }
 0x38e   :  { %v1012_v3 = vsub.f32 %v2696_v29, %v925_v30  ;;  %v1013_v27 = vsub.f32 %v2741_v16, %v925_v30 }
 0x38f   :  { %v2843_v4 = vpop.f32.mrf.mxu0 }
 0x390   :  { %v1090_v40 = vmul.f32 1.442695, %v1012_v3  ;;  %v1092_v0 = vmul.f32 1.442695, %v1013_v27  ;;  %v1834_v14 = vpop.eup %1833  ;;  %v968_v54 = vmax.f32 %v2829_v7, %v2843_v4 }
 0x391   :  { %v1836_v43 = vpop.eup %1835 }
 0x392   :  { %1837 = vpow2.f32 %v1090_v40  ;;  %963 = vmax.xlane.f32.xlu2 %v962_v2  ;;  %v1208_v40 = vadd.f32 %v1836_v43, %v1834_v14 }
 0x393   :  { %1839 = vpow2.f32 %v1092_v0 }
 0x395   :  { %v928_v46 = vpop.xlane.xlu0 %927 }
 0x396   :  { %v1014_v29 = vsub.f32 %v2715_v59, %v928_v46  ;;  %v1015_v16 = vsub.f32 %v2747_v10, %v928_v46  ;;  %v2855_v59 = vpop.f32.mrf.mxu3 }
 0x397   :  { %v2851_v21 = vpop.f32.mrf.mxu0 }
 0x398   :  { %v1838_v19 = vpop.eup %1837  ;;  %v1094_v1 = vmul.f32 1.442695, %v1014_v29  ;;  %v1096_v5 = vmul.f32 1.442695, %v1015_v16 }
 0x399   :  { %v1840_v34 = vpop.eup %1839  ;;  %v1292_v28 = vpack.c.bf16 %v1838_v19, %v1834_v14  ;;  %v971_v14 = vmax.f32 %v2838_v56, %v2851_v21 }
 0x39a   :  { %1841 = vpow2.f32 %v1094_v1  ;;  %966 = vmax.xlane.f32.xlu2 %v965_v13  ;;  %v1293_v44 = vpack.c.bf16 %v1840_v34, %v1836_v43  ;;  %v1211_v55 = vadd.f32 %v1840_v34, %v1838_v19 }
 0x39b   :  { %1843 = vpow2.f32 %v1096_v5  ;;  %1341 = vmatmul.bf16.gmra.mxu1 %v1292_v28 }
 0x39c   :  { %1430 = vmatmul.bf16.gmra.mxu2 %v1293_v44  ;;  %1212 = vadd.xlane.f32.xlu0 %v1211_v55 }
 0x39d   :  { %v931_v10 = vpop.xlane.xlu1 %930 }
 0x39e   :  { %v1016_v6 = vsub.f32 %v2721_v48, %v931_v10  ;;  %v1017_v39 = vsub.f32 %v2754_v42, %v931_v10  ;;  %v2865_v42 = vpop.f32.mrf.mxu3 }
 0x39f   :  { %v2859_v23 = vpop.f32.mrf.mxu0 }
 0x3a0   :  { %v1842_v62 = vpop.eup %1841  ;;  %v1098_v53 = vmul.f32 1.442695, %v1016_v6  ;;  %v1100_v11 = vmul.f32 1.442695, %v1017_v39  ;;  %v974_v55 = vmax.f32 %v2847_v22, %v2859_v23 }
 0x3a1   :  { %v1844_v51 = vpop.eup %1843 }
 0x3a2   :  { %1845 = vpow2.f32 %v1098_v53  ;;  %969 = vmax.xlane.f32.xlu2 %v968_v54  ;;  %v1214_v17 = vadd.f32 %v1844_v51, %v1842_v62 }
 0x3a3   :  { %1847 = vpow2.f32 %v1100_v11 }
 0x3a4   :  { %1215 = vadd.xlane.f32.xlu1 %v1214_v17 }
 0x3a5   :  { %v934_v20 = vpop.xlane.xlu2 %933 }
 0x3a6   :  { %v1018_v9 = vsub.f32 %v2728_v45, %v934_v20  ;;  %v1019_v48 = vsub.f32 %v2760_v18, %v934_v20  ;;  %v2878_v13 = vpop.f32.mrf.mxu3 }
 0x3a7   :  { %v2867_v63 = vpop.f32.mrf.mxu0 }
 0x3a8   :  { %v2869_v30 = vpop.eup %1845  ;;  %v1102_v3 = vmul.f32 1.442695, %v1018_v9  ;;  %v1104_v27 = vmul.f32 1.442695, %v1019_v48 }
 0x3a9   :  { %v1848_v0 = vpop.eup %1847  ;;  %v1294_v2 = vpack.c.bf16 %v2869_v30, %v1842_v62 }
 0x3aa   :  { %1849 = vpow2.f32 %v1102_v3  ;;  %1209 = vadd.xlane.f32.xlu2 %v1208_v40  ;;  %v1295_v46 = vpack.c.bf16 %v1848_v0, %v1844_v51  ;;  %v977_v3 = vmax.f32 %v2855_v59, %v2867_v63 }
 0x3ab   :  { %1851 = vpow2.f32 %v1104_v27  ;;  %1346 = vmatmul.bf16.gmra.mxu1 %v1294_v2 }
 0x3ac   :  { %1435 = vmatmul.bf16.gmra.mxu2 %v1295_v46 }
 0x3ad   :  { %v937_v45 = vpop.xlane.xlu2 %936 }
 0x3ae   :  { %v1020_v18 = vsub.f32 %v2738_v61, %v937_v45  ;;  %v1021_v29 = vsub.f32 %v2765_v12, %v937_v45  ;;  %v2886_v11 = vpop.f32.mrf.mxu3 }
 0x3af   :  { %v2874_v16 = vpop.f32.mrf.mxu0 }
 0x3b0   :  { %v1850_v19 = vpop.eup %1849  ;;  %v1106_v1 = vmul.f32 1.442695, %v1020_v18  ;;  %v1108_v5 = vmul.f32 1.442695, %v1021_v29  ;;  %v1217_v29 = vadd.f32 %v1848_v0, %v2869_v30 }
 0x3b1   :  { %v1852_v43 = vpop.eup %1851 }
 0x3b2   :  { %1853 = vpow2.f32 %v1106_v1  ;;  %972 = vmax.xlane.f32.xlu2 %v971_v14  ;;  %v1220_v34 = vadd.f32 %v1852_v43, %v1850_v19 }
 0x3b3   :  { %1855 = vpow2.f32 %v1108_v5 }
 0x3b4   :  { %1221 = vadd.xlane.f32.xlu0 %v1220_v34 }
 0x3b5   :  { %v940_v28 = vpop.xlane.xlu2 %939 }
 0x3b6   :  { %v1022_v44 = vsub.f32 %v2745_v47, %v940_v28  ;;  %v1023_v6 = vsub.f32 %v2771_v36, %v940_v28  ;;  %v2894_v27 = vpop.f32.mrf.mxu3 }
 0x3b7   :  { %v2880_v61 = vpop.f32.mrf.mxu0 }
 0x3b8   :  { %v1854_v12 = vpop.eup %1853  ;;  %v1110_v54 = vmul.f32 1.442695, %v1022_v44  ;;  %v1112_v51 = vmul.f32 1.442695, %v1023_v6 }
 0x3b9   :  { %v1856_v10 = vpop.eup %1855  ;;  %v1296_v39 = vpack.c.bf16 %v1854_v12, %v1850_v19 }
 0x3ba   :  { %975 = vmax.xlane.f32.xlu2 %v974_v55  ;;  %v1297_v62 = vpack.c.bf16 %v1856_v10, %v1852_v43  ;;  %v1223_v53 = vadd.f32 %v1856_v10, %v1854_v12  ;;  %1857 = vpow2.f32 %v1110_v54  ;;  %v980_v55 = vmax.f32 %v2865_v42, %v2874_v16 }
 0x3bb   :  { %1351 = vmatmul.bf16.gmra.mxu1 %v1296_v39  ;;  %1859 = vpow2.f32 %v1112_v51 }
 0x3bc   :  { %1440 = vmatmul.bf16.gmra.mxu2 %v1297_v62  ;;  %1224 = vadd.xlane.f32.xlu1 %v1223_v53 }
 0x3bd   :  { %v943_v17 = vpop.xlane.xlu2 %942 }
 0x3be   :  { %v1024_v47 = vsub.f32 %v2752_v41, %v943_v17  ;;  %v1025_v20 = vsub.f32 %v2779_v26, %v943_v17  ;;  %v2909_v12 = vpop.f32.mrf.mxu3  ;;  %v983_v17 = vmax.f32 %v2878_v13, %v2880_v61 }
 0x3bf   :  { %v2890_v9 = vpop.f32.mrf.mxu0 }
 0x3c0   :  { %v1114_v36 = vmul.f32 1.442695, %v1024_v47  ;;  %v1116_v48 = vmul.f32 1.442695, %v1025_v20  ;;  %v2896_v2 = vpop.eup %1857 }
 0x3c1   :  { %v2899_v26 = vpop.eup %1859 }
 0x3c2   :  { %1861 = vpow2.f32 %v1114_v36  ;;  %978 = vmax.xlane.f32.xlu2 %v977_v3 }
 0x3c3   :  { %1863 = vpow2.f32 %v1116_v48 }
 0x3c5   :  { %v946_v40 = vpop.xlane.xlu2 %945 }
 0x3c6   :  { %v1026_v41 = vsub.f32 %v2758_v31, %v946_v40  ;;  %v1027_v46 = vsub.f32 %v2785_v32, %v946_v40 }
 0x3c7   :  { %v2902_v45 = vpop.f32.mrf.mxu0 }
 0x3c8   :  { %v1862_v18 = vpop.eup %1861  ;;  %v1118_v5 = vmul.f32 1.442695, %v1026_v41  ;;  %v1120_v34 = vmul.f32 1.442695, %v1027_v46 }
 0x3c9   :  { %v1864_v19 = vpop.eup %1863  ;;  %v1298_v1 = vpack.c.bf16 %v1862_v18, %v2896_v2 }
 0x3ca   :  { %1218 = vadd.xlane.f32.xlu2 %v1217_v29  ;;  %v1299_v14 = vpack.c.bf16 %v1864_v19, %v2899_v26  ;;  %v1229_v43 = vadd.f32 %v1864_v19, %v1862_v18  ;;  %1865 = vpow2.f32 %v1118_v5  ;;  %v986_v18 = vmax.f32 %v2886_v11, %v2890_v9 }
 0x3cb   :  { %1356 = vmatmul.bf16.gmra.mxu1 %v1298_v1  ;;  %1867 = vpow2.f32 %v1120_v34 }
 0x3cc   :  { %1445 = vmatmul.bf16.gmra.mxu2 %v1299_v14  ;;  %1230 = vadd.xlane.f32.xlu0 %v1229_v43 }
 0x3cd   :  { %v949_v31 = vpop.xlane.xlu2 %948 }
 0x3ce   :  { %v1028_v32 = vsub.f32 %v2769_v35, %v949_v31  ;;  %v1029_v28 = vsub.f32 %v2795_v33, %v949_v31 }
 0x3cf   :  { %v2911_v30 = vpop.f32.mrf.mxu0 }
 0x3d0   :  { %v1122_v0 = vmul.f32 1.442695, %v1028_v32  ;;  %v1124_v44 = vmul.f32 1.442695, %v1029_v28  ;;  %v992_v10 = vmax.f32 %v2909_v12, %v2911_v30  ;;  %v1866_v35 = vpop.eup %1865 }
 0x3d1   :  { %v1868_v6 = vpop.eup %1867 }
 0x3d2   :  { %1869 = vpow2.f32 %v1122_v0  ;;  %981 = vmax.xlane.f32.xlu2 %v980_v55  ;;  %993 = vmax.xlane.f32.xlu1 %v992_v10  ;;  %v1232_v47 = vadd.f32 %v1868_v6, %v1866_v35 }
 0x3d3   :  { %1871 = vpow2.f32 %v1124_v44 }
 0x3d5   :  { %v952_v33 = vpop.xlane.xlu2 %951 }
 0x3d6   :  { %v1030_v39 = vsub.f32 %v2777_v25, %v952_v33  ;;  %v1031_v62 = vsub.f32 %v2801_v60, %v952_v33 }
 0x3d7   :  { %v1192_v14 = vpop.xlane.xlu1 %1191 }
 0x3d8   :  { %v2919_v53 = vpop.eup %1869  ;;  %v1126_v54 = vmul.f32 1.442695, %v1030_v39  ;;  %v1128_v51 = vmul.f32 1.442695, %v1031_v62  ;;  %v2943_v62 = vpop.f32.mrf.mxu0 }
 0x3d9   :  { %v2923_v20 = vpop.eup %1871  ;;  %v1300_v36 = vpack.c.bf16 %v2919_v53, %v1866_v35  ;;  %v989_v35 = vmax.f32 %v2894_v27, %v2902_v45 }
 0x3da   :  { %1873 = vpow2.f32 %v1126_v54  ;;  %984 = vmax.xlane.f32.xlu2 %v983_v17  ;;  %1233 = vadd.xlane.f32.xlu1 %v1232_v47  ;;  %v1301_v48 = vpack.c.bf16 %v2923_v20, %v1868_v6  ;;  %v2947_v47 = vpop.f32.mrf.mxu3 }
 0x3db   :  { %1875 = vpow2.f32 %v1128_v51  ;;  %1361 = vmatmul.bf16.gmra.mxu1 %v1300_v36 }
 0x3dc   :  { %1450 = vmatmul.bf16.gmra.mxu2 %v1301_v48 }
 0x3dd   :  { %v955_v25 = vpop.xlane.xlu2 %954 }
 0x3de   :  { %v1032_v60 = vsub.f32 %v2783_v58, %v955_v25  ;;  %v1033_v3 = vsub.f32 %v2809_v8, %v955_v25  ;;  %v1226_v58 = vadd.f32 %v2899_v26, %v2896_v2 }
 0x3e0   :  { %v1874_v40 = vpop.eup %1873  ;;  %v1130_v41 = vmul.f32 1.442695, %v1032_v60  ;;  %v1132_v46 = vmul.f32 1.442695, %v1033_v3 }
 0x3e1   :  { %v1876_v29 = vpop.eup %1875 }
 0x3e2   :  { %1877 = vpow2.f32 %v1130_v41  ;;  %987 = vmax.xlane.f32.xlu2 %v986_v18  ;;  %v1238_v19 = vadd.f32 %v1876_v29, %v1874_v40 }
 0x3e3   :  { %1879 = vpow2.f32 %v1132_v46 }
 0x3e4   :  { %1239 = vadd.xlane.f32.xlu0 %v1238_v19  ;;  %1881 = vrcp.f32 %v1192_v14  ;;  %v1235_v19 = vadd.f32 %v2923_v20, %v2919_v53 }
 0x3e5   :  { %v2931_v1 = vpop.xlane.xlu2 %1194 }
 0x3e7   :  { %v1198_v33 = vpop.xlane.xlu1 %1197 }
 0x3e8   :  { %v1878_v5 = vpop.eup %1877  ;;  %v1327_v43 = vpop.f32.mrf.mxu1  ;;  %1883 = vrcp.f32 %v1198_v33 }
 0x3e9   :  { %v1880_v8 = vpop.eup %1879  ;;  %v1302_v34 = vpack.c.bf16 %v1878_v5, %v1874_v40 }
 0x3ea   :  { %1227 = vadd.xlane.f32.xlu2 %v1226_v58  ;;  %v1303_v31 = vpack.c.bf16 %v1880_v8, %v1876_v29  ;;  %v1241_v32 = vadd.f32 %v1880_v8, %v1878_v5  ;;  %v1882_v2 = vpop.eup %1881 }
 0x3eb   :  { %1366 = vmatmul.bf16.gmra.mxu1 %v1302_v34 }
 0x3ec   :  { %1455 = vmatmul.bf16.gmra.mxu2 %v1303_v31  ;;  %1242 = vadd.xlane.f32.xlu1 %v1241_v32 }
 0x3ed   :  { %v958_v28 = vpop.xlane.xlu2 %957 }
 0x3ee   :  { %v1034_v44 = vsub.f32 %v2793_v49, %v958_v28  ;;  %v1035_v26 = vsub.f32 %v2817_v52, %v958_v28  ;;  %v995_v52 = vmax.f32 %v2947_v47, %v2943_v62  ;;  %v1884_v3 = vpop.eup %1883 }
 0x3ef   :  { %v1416_v0 = vpop.f32.mrf.mxu2 }
 0x3f0   :  { %v1417_v55 = vadd.f32 %v1416_v0, %v1327_v43  ;;  %v2936_v10 = vpop.f32.mrf.mxu1  ;;  %v1134_v39 = vmul.f32 1.442695, %v1034_v44  ;;  %v1136_v54 = vmul.f32 1.442695, %v1035_v26 }
 0x3f2   :  { %v2941_v6 = vmul.f32 %v1882_v2, %v1417_v55  ;;  %990 = vmax.xlane.f32.xlu2 %v989_v35  ;;  %1885 = vpow2.f32 %v1134_v39 }
 0x3f3   :  { %1887 = vpow2.f32 %v1136_v54 }
 0x3f5   :  { %v961_v51 = vpop.xlane.xlu2 %960 }
 0x3f6   :  { %v1036_v49 = vsub.f32 %v2805_v37, %v961_v51  ;;  %v1037_v17 = vsub.f32 %v2823_v57, %v961_v51 }
 0x3f7   :  { %v2949_v36 = vpop.f32.mrf.mxu2  ;;  %v1204_v31 = vpop.xlane.xlu0 %1203 }
 0x3f8   :  { %v1138_v48 = vmul.f32 1.442695, %v1036_v49  ;;  %v1140_v25 = vmul.f32 1.442695, %v1037_v17  ;;  %v1332_v60 = vpop.f32.mrf.mxu1  ;;  %v1886_v57 = vpop.eup %1885 }
 0x3f9   :  { %v1888_v40 = vpop.eup %1887 }
 0x3fa   :  { %1889 = vpow2.f32 %v1138_v48  ;;  %996 = vmax.xlane.f32.xlu2 %v995_v52  ;;  %v1244_v55 = vadd.f32 %v1888_v40, %v1886_v57 }
 0x3fb   :  { %1891 = vpow2.f32 %v1140_v25 }
 0x3fc   :  { %1893 = vrcp.f32 %v1204_v31 }
 0x3fd   :  { %v2953_v37 = vpop.xlane.xlu2 %1200 }
 0x3ff   :  { %v1421_v41 = vpop.f32.mrf.mxu2 }
 0x400   :  { %v1890_v46 = vpop.eup %1889  ;;  %v1422_v18 = vadd.f32 %v1421_v41, %v1332_v60  ;;  %v2955_v29 = vpop.f32.mrf.mxu1 }
 0x401   :  { %v1892_v5 = vpop.eup %1891  ;;  %v1304_v14 = vpack.c.bf16 %v1890_v46, %v1886_v57 }
 0x402   :  { %v2959_v43 = vmul.f32 %v1884_v3, %v1422_v18  ;;  %1236 = vadd.xlane.f32.xlu2 %v1235_v19  ;;  %v1305_v58 = vpack.c.bf16 %v1892_v5, %v1888_v40  ;;  %v1247_v8 = vadd.f32 %v1892_v5, %v1890_v46  ;;  %v1894_v33 = vpop.eup %1893 }
 0x403   :  { %1371 = vmatmul.bf16.gmra.mxu1 %v1304_v14 }
 0x404   :  { %1460 = vmatmul.bf16.gmra.mxu2 %v1305_v58  ;;  %1248 = vadd.xlane.f32.xlu0 %v1247_v8  ;;  %v2975_v58 = vpop.xlane.xlu1 %1206 }
 0x405   :  { %v964_v34 = vpop.xlane.xlu2 %963 }
 0x406   :  { %v1038_v32 = vsub.f32 %v2813_v50, %v964_v34  ;;  %v1039_v28 = vsub.f32 %v2831_v15, %v964_v34 }
 0x407   :  { %v2963_v0 = vpop.f32.mrf.mxu2 }
 0x408   :  { %v1142_v44 = vmul.f32 1.442695, %v1038_v32  ;;  %v1144_v53 = vmul.f32 1.442695, %v1039_v28  ;;  %v1337_v20 = vpop.f32.mrf.mxu1 }
 0x40a   :  { %1895 = vpow2.f32 %v1142_v44  ;;  %1245 = vadd.xlane.f32.xlu2 %v1244_v55 }
 0x40b   :  { %1897 = vpow2.f32 %v1144_v53 }
 0x40d   :  { %v967_v35 = vpop.xlane.xlu2 %966 }
 0x40e   :  { %v1040_v2 = vsub.f32 %v2819_v38, %v967_v35  ;;  %v1041_v26 = vsub.f32 %v2835_v24, %v967_v35 }
 0x40f   :  { %v1426_v39 = vpop.f32.mrf.mxu2 }
 0x410   :  { %v1896_v50 = vpop.eup %1895  ;;  %v1146_v54 = vmul.f32 1.442695, %v1040_v2  ;;  %v1148_v15 = vmul.f32 1.442695, %v1041_v26  ;;  %v1427_v51 = vadd.f32 %v1426_v39, %v1337_v20  ;;  %v2967_v49 = vpop.f32.mrf.mxu1 }
 0x411   :  { %v1898_v17 = vpop.eup %1897 }
 0x412   :  { %1899 = vpow2.f32 %v1146_v54  ;;  %v2969_v52 = vmul.f32 %v1894_v33, %v1427_v51  ;;  %v1250_v48 = vadd.f32 %v1898_v17, %v1896_v50  ;;  %v2985_v54 = vpop.xlane.xlu0 %1212 }
 0x413   :  { %1901 = vpow2.f32 %v1148_v15 }
 0x414   :  { %1251 = vadd.xlane.f32.xlu1 %v1250_v48 }
 0x415   :  { %v970_v25 = vpop.xlane.xlu2 %969 }
 0x416   :  { %v1042_v38 = vsub.f32 %v2829_v7, %v970_v25  ;;  %v1043_v24 = vsub.f32 %v2843_v4, %v970_v25 }
 0x417   :  { %v2973_v60 = vpop.f32.mrf.mxu2  ;;  %v1216_v20 = vpop.xlane.xlu1 %1215 }
 0x418   :  { %v1900_v3 = vpop.eup %1899  ;;  %v1150_v57 = vmul.f32 1.442695, %v1042_v38  ;;  %v1152_v40 = vmul.f32 1.442695, %v1043_v24  ;;  %v1342_v41 = vpop.f32.mrf.mxu1 }
 0x419   :  { %v1902_v46 = vpop.eup %1901  ;;  %v1306_v18 = vpack.c.bf16 %v1900_v3, %v1896_v50 }
 0x41a   :  { %1903 = vpow2.f32 %v1150_v57  ;;  %v1307_v19 = vpack.c.bf16 %v1902_v46, %v1898_v17  ;;  %v1253_v5 = vadd.f32 %v1902_v46, %v1900_v3 }
 0x41b   :  { %1905 = vpow2.f32 %v1152_v40  ;;  %1376 = vmatmul.bf16.gmra.mxu1 %v1306_v18 }
 0x41c   :  { %1465 = vmatmul.bf16.gmra.mxu2 %v1307_v19  ;;  %1254 = vadd.xlane.f32.xlu2 %v1253_v5 }
 0x41d   :  { %v1210_v14 = vpop.xlane.xlu2 %1209 }
 0x41e   :  { %1907 = vrcp.f32 %v1210_v14 }
 0x41f   :  { %v1431_v7 = vpop.f32.mrf.mxu2  ;;  %1909 = vrcp.f32 %v1216_v20 }
 0x420   :  { %v1904_v4 = vpop.eup %1903  ;;  %v1432_v8 = vadd.f32 %v1431_v7, %v1342_v41  ;;  %v2977_v34 = vpop.f32.mrf.mxu1 }
 0x421   :  { %v1906_v31 = vpop.eup %1905 }
 0x422   :  { %v1256_v32 = vadd.f32 %v1906_v31, %v1904_v4 }
 0x424   :  { %v1908_v28 = vpop.eup %1907  ;;  %1257 = vadd.xlane.f32.xlu0 %v1256_v32 }
 0x425   :  { %v2979_v44 = vmul.f32 %v1908_v28, %v1432_v8  ;;  %v973_v53 = vpop.xlane.xlu2 %972  ;;  %v1910_v17 = vpop.eup %1909 }
 0x426   :  { %v1044_v55 = vsub.f32 %v2838_v56, %v973_v53  ;;  %v1045_v35 = vsub.f32 %v2851_v21, %v973_v53 }
 0x427   :  { %v2983_v2 = vpop.f32.mrf.mxu2 }
 0x428   :  { %v1154_v26 = vmul.f32 1.442695, %v1044_v55  ;;  %v1156_v33 = vmul.f32 1.442695, %v1045_v35  ;;  %v1347_v39 = vpop.f32.mrf.mxu1 }
 0x42a   :  { %1911 = vpow2.f32 %v1154_v26 }
 0x42b   :  { %1913 = vpow2.f32 %v1156_v33 }
 0x42d   :  { %v976_v50 = vpop.xlane.xlu2 %975 }
 0x42e   :  { %v1046_v15 = vsub.f32 %v2847_v22, %v976_v50  ;;  %v1047_v51 = vsub.f32 %v2859_v23, %v976_v50  ;;  %v1222_v23 = vpop.xlane.xlu0 %1221 }
 0x42f   :  { %v1436_v48 = vpop.f32.mrf.mxu2 }
 0x430   :  { %v1912_v56 = vpop.eup %1911  ;;  %v1158_v25 = vmul.f32 1.442695, %v1046_v15  ;;  %v1160_v21 = vmul.f32 1.442695, %v1047_v51  ;;  %v1437_v38 = vadd.f32 %v1436_v48, %v1347_v39  ;;  %v1349_v24 = vpop.f32.mrf.mxu1 }
 0x431   :  { %v1914_v3 = vpop.eup %1913  ;;  %v1308_v57 = vpack.c.bf16 %v1912_v56, %v1904_v4 }
 0x432   :  { %1915 = vpow2.f32 %v1158_v25  ;;  %v2989_v40 = vmul.f32 %v1910_v17, %v1437_v38  ;;  %v1309_v41 = vpack.c.bf16 %v1914_v3, %v1906_v31  ;;  %v1259_v46 = vadd.f32 %v1914_v3, %v1912_v56 }
 0x433   :  { %1917 = vpow2.f32 %v1160_v21  ;;  %1381 = vmatmul.bf16.gmra.mxu1 %v1308_v57 }
 0x434   :  { %1470 = vmatmul.bf16.gmra.mxu2 %v1309_v41  ;;  %1260 = vadd.xlane.f32.xlu1 %v1259_v46  ;;  %1919 = vrcp.f32 %v1222_v23 }
 0x435   :  { %v979_v22 = vpop.xlane.xlu2 %978 }
 0x436   :  { %v1048_v18 = vsub.f32 %v2855_v59, %v979_v22  ;;  %v1049_v19 = vsub.f32 %v2867_v63, %v979_v22  ;;  %v1225_v59 = vpop.xlane.xlu1 %1224 }
 0x437   :  { %v1438_v5 = vpop.f32.mrf.mxu2 }
 0x438   :  { %v1916_v14 = vpop.eup %1915  ;;  %v1162_v7 = vmul.f32 1.442695, %v1048_v18  ;;  %v1164_v8 = vmul.f32 1.442695, %v1049_v19  ;;  %v1439_v4 = vadd.f32 %v1438_v5, %v1349_v24  ;;  %v1352_v32 = vpop.f32.mrf.mxu1 }
 0x439   :  { %v1918_v28 = vpop.eup %1917 }
 0x43a   :  { %1921 = vpow2.f32 %v1162_v7  ;;  %v1262_v31 = vadd.f32 %v1918_v28, %v1916_v14  ;;  %v1920_v20 = vpop.eup %1919 }
 0x43b   :  { %1923 = vpow2.f32 %v1164_v8 }
 0x43c   :  { %1263 = vadd.xlane.f32.xlu2 %v1262_v31 }
 0x43d   :  { %v1219_v53 = vpop.xlane.xlu2 %1218 }
 0x43e   :  { %1925 = vrcp.f32 %v1219_v53 }
 0x43f   :  { %v1441_v55 = vpop.f32.mrf.mxu2  ;;  %1927 = vrcp.f32 %v1225_v59  ;;  %v1231_v19 = vpop.xlane.xlu0 %1230 }
 0x440   :  { %v1922_v35 = vpop.eup %1921  ;;  %v1442_v26 = vadd.f32 %v1441_v55, %v1352_v32  ;;  %v1354_v63 = vpop.f32.mrf.mxu1 }
 0x441   :  { %v1924_v33 = vpop.eup %1923  ;;  %v1310_v39 = vpack.c.bf16 %v1922_v35, %v1916_v14 }
 0x442   :  { %v2993_v50 = vmul.f32 %v1920_v20, %v1442_v26  ;;  %v1311_v15 = vpack.c.bf16 %v1924_v33, %v1918_v28  ;;  %v1265_v51 = vadd.f32 %v1924_v33, %v1922_v35 }
 0x443   :  { %1386 = vmatmul.bf16.gmra.mxu1 %v1310_v39 }
 0x444   :  { %v1926_v17 = vpop.eup %1925  ;;  %1475 = vmatmul.bf16.gmra.mxu2 %v1311_v15  ;;  %1266 = vadd.xlane.f32.xlu0 %v1265_v51 }
 0x445   :  { %v982_v48 = vpop.xlane.xlu2 %981  ;;  %v2995_v56 = vmul.f32 %v1926_v17, %v1439_v4  ;;  %v1928_v41 = vpop.eup %1927 }
 0x446   :  { %v1050_v25 = vsub.f32 %v2865_v42, %v982_v48  ;;  %v1051_v21 = vsub.f32 %v2874_v16, %v982_v48  ;;  %v994_v23 = vpop.xlane.xlu1 %993 }
 0x447   :  { %v1443_v38 = vpop.f32.mrf.mxu2  ;;  %v1058_v42 = vsub.f32 %v2909_v12, %v994_v23  ;;  %v1059_v8 = vsub.f32 %v2911_v30, %v994_v23 }
 0x448   :  { %v1166_v24 = vmul.f32 1.442695, %v1050_v25  ;;  %v1168_v3 = vmul.f32 1.442695, %v1051_v21  ;;  %v1444_v57 = vadd.f32 %v1443_v38, %v1354_v63  ;;  %v1357_v46 = vpop.f32.mrf.mxu1 }
 0x449   :  { %v1182_v20 = vmul.f32 1.442695, %v1058_v42  ;;  %v1184_v35 = vmul.f32 1.442695, %v1059_v8 }
 0x44a   :  { %1929 = vpow2.f32 %v1166_v24  ;;  %v2999_v22 = vmul.f32 %v1928_v41, %v1444_v57 }
 0x44b   :  { %1931 = vpow2.f32 %v1168_v3 }
 0x44c   :  { %1933 = vrcp.f32 %v1231_v19 }
 0x44d   :  { %v985_v18 = vpop.xlane.xlu2 %984 }
 0x44e   :  { %v1052_v5 = vsub.f32 %v2878_v13, %v985_v18  ;;  %v1053_v14 = vsub.f32 %v2880_v61, %v985_v18  ;;  %v1234_v61 = vpop.xlane.xlu1 %1233 }
 0x44f   :  { %v1446_v16 = vpop.f32.mrf.mxu2 }
 0x450   :  { %v1930_v7 = vpop.eup %1929  ;;  %v1170_v4 = vmul.f32 1.442695, %v1052_v5  ;;  %v1172_v32 = vmul.f32 1.442695, %v1053_v14  ;;  %v1447_v28 = vadd.f32 %v1446_v16, %v1357_v46  ;;  %v1359_v55 = vpop.f32.mrf.mxu1 }
 0x451   :  { %v1932_v31 = vpop.eup %1931 }
 0x452   :  { %1935 = vpow2.f32 %v1170_v4  ;;  %v1268_v53 = vadd.f32 %v1932_v31, %v1930_v7  ;;  %v1934_v26 = vpop.eup %1933 }
 0x453   :  { %1937 = vpow2.f32 %v1172_v32 }
 0x454   :  { %1269 = vadd.xlane.f32.xlu1 %v1268_v53  ;;  %1939 = vpow2.f32 %v1182_v20 }
 0x455   :  { %v988_v13 = vpop.xlane.xlu2 %987  ;;  %1941 = vpow2.f32 %v1184_v35 }
 0x456   :  { %v1054_v12 = vsub.f32 %v2886_v11, %v988_v13  ;;  %v1055_v59 = vsub.f32 %v2890_v9, %v988_v13  ;;  %1943 = vrcp.f32 %v1234_v61 }
 0x457   :  { %v1448_v30 = vpop.f32.mrf.mxu2 }
 0x458   :  { %v1936_v63 = vpop.eup %1935  ;;  %v1174_v33 = vmul.f32 1.442695, %v1054_v12  ;;  %v1176_v39 = vmul.f32 1.442695, %v1055_v59  ;;  %v1449_v15 = vadd.f32 %v1448_v30, %v1359_v55  ;;  %v1362_v9 = vpop.f32.mrf.mxu1 }
 0x459   :  { %v1938_v51 = vpop.eup %1937  ;;  %v1312_v17 = vpack.c.bf16 %v1936_v63, %v1930_v7 }
 0x45a   :  { %1945 = vpow2.f32 %v1174_v33  ;;  %v3007_v48 = vmul.f32 %v1934_v26, %v1449_v15  ;;  %v1313_v25 = vpack.c.bf16 %v1938_v51, %v1932_v31  ;;  %v1271_v21 = vadd.f32 %v1938_v51, %v1936_v63  ;;  %v1940_v11 = vpop.eup %1939 }
 0x45b   :  { %1947 = vpow2.f32 %v1176_v39  ;;  %1391 = vmatmul.bf16.gmra.mxu1 %v1312_v17  ;;  %v1942_v24 = vpop.eup %1941  ;;  %v1240_v17 = vpop.xlane.xlu0 %1239 }
 0x45c   :  { %1480 = vmatmul.bf16.gmra.mxu2 %v1313_v25  ;;  %1272 = vadd.xlane.f32.xlu2 %v1271_v21  ;;  %v1944_v3 = vpop.eup %1943  ;;  %v1280_v5 = vadd.f32 %v1942_v24, %v1940_v11 }
 0x45d   :  { %v1228_v38 = vpop.xlane.xlu2 %1227 }
 0x45e   :  { %1949 = vrcp.f32 %v1228_v38 }
 0x45f   :  { %v1451_v57 = vpop.f32.mrf.mxu2 }
 0x460   :  { %v1946_v41 = vpop.eup %1945  ;;  %v1452_v46 = vadd.f32 %v1451_v57, %v1362_v9  ;;  %v1364_v4 = vpop.f32.mrf.mxu1 }
 0x461   :  { %v1948_v23 = vpop.eup %1947  ;;  %v1243_v57 = vpop.xlane.xlu1 %1242 }
 0x462   :  { %v3009_v18 = vmul.f32 %v1944_v3, %v1452_v46  ;;  %v1274_v19 = vadd.f32 %v1948_v23, %v1946_v41 }
 0x464   :  { %v1950_v14 = vpop.eup %1949  ;;  %1275 = vadd.xlane.f32.xlu0 %v1274_v19  ;;  %1281 = vadd.xlane.f32.xlu2 %v1280_v5 }
 0x465   :  { %v991_v42 = vpop.xlane.xlu2 %990  ;;  %v3011_v16 = vmul.f32 %v1950_v14, %v1447_v28 }
 0x466   :  { %v1056_v7 = vsub.f32 %v2894_v27, %v991_v42  ;;  %v1057_v8 = vsub.f32 %v2902_v45, %v991_v42 }
 0x467   :  { %v1453_v32 = vpop.f32.mrf.mxu2 }
 0x468   :  { %v1178_v31 = vmul.f32 1.442695, %v1056_v7  ;;  %v1180_v53 = vmul.f32 1.442695, %v1057_v8  ;;  %v1454_v20 = vadd.f32 %v1453_v32, %v1364_v4 }
 0x46a   :  { %1951 = vpow2.f32 %v1178_v31 }
 0x46b   :  { %1953 = vpow2.f32 %v1180_v53 }
 0x46d   :  { %v997_v55 = vpop.xlane.xlu2 %996 }
 0x46e   :  { %v1060_v35 = vsub.f32 %v2947_v47, %v997_v55  ;;  %v1061_v13 = vsub.f32 %v2943_v62, %v997_v55  ;;  %v1367_v47 = vpop.f32.mrf.mxu1 }
 0x46f   :  { %v1456_v51 = vpop.f32.mrf.mxu2 }
 0x470   :  { %v1952_v61 = vpop.eup %1951  ;;  %v1186_v12 = vmul.f32 1.442695, %v1060_v35  ;;  %v1188_v28 = vmul.f32 1.442695, %v1061_v13  ;;  %v1457_v38 = vadd.f32 %v1456_v51, %v1367_v47 }
 0x471   :  { %v1954_v59 = vpop.eup %1953  ;;  %v1314_v26 = vpack.c.bf16 %v1952_v61, %v1946_v41 }
 0x472   :  { %1955 = vpow2.f32 %v1186_v12  ;;  %v1315_v27 = vpack.c.bf16 %v1954_v59, %v1948_v23  ;;  %v1277_v45 = vadd.f32 %v1954_v59, %v1952_v61 }
 0x473   :  { %1957 = vpow2.f32 %v1188_v28  ;;  %1396 = vmatmul.bf16.gmra.mxu1 %v1314_v26 }
 0x474   :  { %1485 = vmatmul.bf16.gmra.mxu2 %v1315_v27  ;;  %1278 = vadd.xlane.f32.xlu1 %v1277_v45 }
 0x475   :  { %v1237_v30 = vpop.xlane.xlu2 %1236 }
 0x476   :  { %1959 = vrcp.f32 %v1237_v30  ;;  %v1369_v9 = vpop.f32.mrf.mxu1 }
 0x477   :  { %1961 = vrcp.f32 %v1240_v17  ;;  %v1458_v3 = vpop.f32.mrf.mxu2  ;;  %v1249_v8 = vpop.xlane.xlu0 %1248 }
 0x478   :  { %v1956_v63 = vpop.eup %1955  ;;  %1963 = vrcp.f32 %v1243_v57  ;;  %v1459_v19 = vadd.f32 %v1458_v3, %v1369_v9 }
 0x479   :  { %v1958_v33 = vpop.eup %1957  ;;  %v1316_v25 = vpack.c.bf16 %v1956_v63, %v1940_v11 }
 0x47a   :  { %v1283_v39 = vadd.f32 %v1958_v33, %v1956_v63  ;;  %v1317_v21 = vpack.c.bf16 %v1958_v33, %v1942_v24  ;;  %v1419_v63 = vadd.f32 %v2949_v36, %v2936_v10  ;;  %v1424_v36 = vadd.f32 %v2963_v0, %v2955_v29 }
 0x47b   :  { %v1429_v0 = vadd.f32 %v2973_v60, %v2967_v49 }
 0x47c   :  { %v1960_v15 = vpop.eup %1959  ;;  %1284 = vadd.xlane.f32.xlu0 %v1283_v39 }
 0x47d   :  { %v3017_v62 = vmul.f32 %v1960_v15, %v1454_v20  ;;  %v1962_v41 = vpop.eup %1961  ;;  %v1246_v14 = vpop.xlane.xlu2 %1245 }
 0x47e   :  { %v1544_v46 = vmul.f32 %v1962_v41, %v1457_v38  ;;  %v1964_v42 = vpop.eup %1963  ;;  %1965 = vrcp.f32 %v1246_v14 }
 0x47f   :  { %v1545_v7 = vmul.f32 %v1964_v42, %v1459_v19  ;;  %1967 = vrcp.f32 %v1249_v8 }
 0x480   :  { %v1372_v23 = vpop.f32.mrf.mxu1 }
 0x483   :  { %1401 = vmatmul.bf16.gmra.mxu1 %v1316_v25 }
 0x484   :  { %1490 = vmatmul.bf16.gmra.mxu2 %v1317_v21  ;;  %v1966_v4 = vpop.eup %1965 }
 0x485   :  { %v1968_v35 = vpop.eup %1967 }
 0x487   :  { %v1461_v5 = vpop.f32.mrf.mxu2  ;;  %v1252_v55 = vpop.xlane.xlu1 %1251 }
 0x488   :  { %v1462_v11 = vadd.f32 %v1461_v5, %v1372_v23  ;;  %v1374_v24 = vpop.f32.mrf.mxu1  ;;  %1969 = vrcp.f32 %v1252_v55 }
 0x48a   :  { %v1546_v31 = vmul.f32 %v1966_v4, %v1462_v11 }
 0x48d   :  { %1592 = vxpose.xlu2.b32.start [1/16] (narrow) %v1544_v46, 32 }
 0x48e   :  { %v1970_v26 = vpop.eup %1969 }
 0x48f   :  { %v1463_v32 = vpop.f32.mrf.mxu2  ;;  %v1255_v28 = vpop.xlane.xlu2 %1254 }
 0x490   :  { %v1464_v53 = vadd.f32 %v1463_v32, %v1374_v24  ;;  %1971 = vrcp.f32 %v1255_v28 }
 0x491   :  { %1973 = vrcp.f32 %v2931_v1 }
 0x492   :  { %v1547_v61 = vmul.f32 %v1968_v35, %v1464_v53 }
 0x495   :  { %1593 = vxpose.xlu2.b32.cont [2/16] (narrow) %v1545_v7, 32 }
 0x496   :  { %v1972_v47 = vpop.eup %1971 }
 0x497   :  { %v1258_v33 = vpop.xlane.xlu0 %1257  ;;  %v1974_v15 = vpop.eup %1973 }
 0x498   :  { %v1377_v20 = vpop.f32.mrf.mxu1  ;;  %1975 = vrcp.f32 %v1258_v33  ;;  %v1529_v17 = vmul.f32 %v1974_v15, %v1419_v63 }
 0x49d   :  { %1594 = vxpose.xlu2.b32.cont [3/16] (narrow) %v1546_v31, 32 }
 0x49e   :  { %v1976_v1 = vpop.eup %1975 }
 0x49f   :  { %v1466_v13 = vpop.f32.mrf.mxu2 }
 0x4a0   :  { %v1467_v12 = vadd.f32 %v1466_v13, %v1377_v20  ;;  %v1379_v59 = vpop.f32.mrf.mxu1  ;;  %v1434_v20 = vadd.f32 %v2983_v2, %v2977_v34 }
 0x4a2   :  { %v1548_v27 = vmul.f32 %v1970_v26, %v1467_v12 }
 0x4a5   :  { %1595 = vxpose.xlu2.b32.cont [4/16] (narrow) %v1547_v61, 32 }
 0x4a7   :  { %v1468_v45 = vpop.f32.mrf.mxu2  ;;  %v1261_v21 = vpop.xlane.xlu1 %1260 }
 0x4a8   :  { %v1469_v30 = vadd.f32 %v1468_v45, %v1379_v59  ;;  %1977 = vrcp.f32 %v1261_v21 }
 0x4a9   :  { %1979 = vrcp.f32 %v2953_v37 }
 0x4aa   :  { %v1549_v51 = vmul.f32 %v1972_v47, %v1469_v30 }
 0x4ad   :  { %1596 = vxpose.xlu2.b32.cont [5/16] (narrow) %v1548_v27, 32 }
 0x4ae   :  { %1560 = vxpose.xlu1.b32.start [1/16] (narrow) %v2941_v6, 32  ;;  %v1978_v41 = vpop.eup %1977 }
 0x4af   :  { %v1264_v3 = vpop.xlane.xlu2 %1263  ;;  %v1980_v23 = vpop.eup %1979 }
 0x4b0   :  { %v1382_v39 = vpop.f32.mrf.mxu1  ;;  %1981 = vrcp.f32 %v1264_v3  ;;  %v1531_v19 = vmul.f32 %v1980_v23, %v1424_v36 }
 0x4b5   :  { %1597 = vxpose.xlu2.b32.cont [6/16] (narrow) %v1549_v51, 32 }
 0x4b6   :  { %1561 = vxpose.xlu1.b32.cont [2/16] (narrow) %v1529_v17, 32  ;;  %v1982_v7 = vpop.eup %1981 }
 0x4b7   :  { %v1471_v25 = vpop.f32.mrf.mxu2  ;;  %v1267_v42 = vpop.xlane.xlu0 %1266 }
 0x4b8   :  { %v1472_v9 = vadd.f32 %v1471_v25, %v1382_v39  ;;  %v1384_v6 = vpop.f32.mrf.mxu1  ;;  %1983 = vrcp.f32 %v1267_v42 }
 0x4b9   :  { %1985 = vrcp.f32 %v2975_v58 }
 0x4ba   :  { %v1550_v38 = vmul.f32 %v1976_v1, %v1472_v9 }
 0x4bd   :  { %1598 = vxpose.xlu2.b32.cont [7/16] (narrow) %v1550_v38, 32 }
 0x4be   :  { %1562 = vxpose.xlu1.b32.cont [3/16] (narrow) %v2959_v43, 32  ;;  %v1984_v8 = vpop.eup %1983 }
 0x4bf   :  { %v1473_v10 = vpop.f32.mrf.mxu2  ;;  %v1986_v32 = vpop.eup %1985 }
 0x4c0   :  { %v1474_v57 = vadd.f32 %v1473_v10, %v1384_v6  ;;  %v1387_v5 = vpop.f32.mrf.mxu1  ;;  %v1533_v31 = vmul.f32 %v1986_v32, %v1429_v0 }
 0x4c2   :  { %v1551_v46 = vmul.f32 %v1978_v41, %v1474_v57 }
 0x4c5   :  { %1599 = vxpose.xlu2.b32.cont [8/16] (narrow) %v1551_v46, 32 }
 0x4c6   :  { %1563 = vxpose.xlu1.b32.cont [4/16] (narrow) %v1531_v19, 32 }
 0x4c7   :  { %v1476_v14 = vpop.f32.mrf.mxu2  ;;  %v1270_v53 = vpop.xlane.xlu1 %1269 }
 0x4c8   :  { %v1477_v37 = vadd.f32 %v1476_v14, %v1387_v5  ;;  %v1389_v29 = vpop.f32.mrf.mxu1  ;;  %1987 = vrcp.f32 %v1270_v53 }
 0x4c9   :  { %1989 = vrcp.f32 %v2985_v54 }
 0x4ca   :  { %v1552_v11 = vmul.f32 %v1982_v7, %v1477_v37 }
 0x4cd   :  { %1600 = vxpose.xlu2.b32.cont [9/16] (narrow) %v1552_v11, 32 }
 0x4ce   :  { %1564 = vxpose.xlu1.b32.cont [5/16] (narrow) %v2969_v52, 32  ;;  %v1988_v60 = vpop.eup %1987 }
 0x4cf   :  { %v1478_v43 = vpop.f32.mrf.mxu2  ;;  %v1273_v55 = vpop.xlane.xlu2 %1272 }
 0x4d0   :  { %v1479_v24 = vadd.f32 %v1478_v43, %v1389_v29  ;;  %v1990_v13 = vpop.eup %1989  ;;  %1991 = vrcp.f32 %v1273_v55 }
 0x4d1   :  { %v1535_v61 = vmul.f32 %v1990_v13, %v1434_v20 }
 0x4d2   :  { %v1553_v4 = vmul.f32 %v1984_v8, %v1479_v24 }
 0x4d5   :  { %1601 = vxpose.xlu2.b32.cont [10/16] (narrow) %v1553_v4, 32 }
 0x4d6   :  { %1565 = vxpose.xlu1.b32.cont [6/16] (narrow) %v1533_v31, 32  ;;  %v1992_v54 = vpop.eup %1991 }
 0x4d7   :  { %v1282_v47 = vpop.xlane.xlu2 %1281 }
 0x4d8   :  { %v1392_v58 = vpop.f32.mrf.mxu1 }
 0x4de   :  { %1566 = vxpose.xlu1.b32.cont [7/16] (narrow) %v2979_v44, 32  ;;  %v1276_v44 = vpop.xlane.xlu0 %1275 }
 0x4df   :  { %v1481_v52 = vpop.f32.mrf.mxu2  ;;  %1993 = vrcp.f32 %v1276_v44 }
 0x4e0   :  { %v1482_v49 = vadd.f32 %v1481_v52, %v1392_v58  ;;  %v1394_v12 = vpop.f32.mrf.mxu1 }
 0x4e2   :  { %v1554_v35 = vmul.f32 %v1988_v60, %v1482_v49 }
 0x4e4   :  { %1602 = vxpose.xlu2.b32.cont [11/16] (narrow) %v1554_v35, 32 }
 0x4e5   :  { %v1994_v30 = vpop.eup %1993 }
 0x4e6   :  { %1567 = vxpose.xlu1.b32.cont [8/16] (narrow) %v1535_v61, 32 }
 0x4e7   :  { %v1483_v28 = vpop.f32.mrf.mxu2  ;;  %v1279_v2 = vpop.xlane.xlu1 %1278 }
 0x4e8   :  { %v1484_v59 = vadd.f32 %v1483_v28, %v1394_v12  ;;  %1995 = vrcp.f32 %v1279_v2 }
 0x4e9   :  { %1997 = vrcp.f32 %v1282_v47 }
 0x4ea   :  { %v1555_v26 = vmul.f32 %v1992_v54, %v1484_v59 }
 0x4ec   :  { %1603 = vxpose.xlu2.b32.cont [12/16] (narrow) %v1555_v26, 32 }
 0x4ee   :  { %1568 = vxpose.xlu1.b32.cont [9/16] (narrow) %v2989_v40, 32  ;;  %v1996_v51 = vpop.eup %1995 }
 0x4ef   :  { %v1285_v25 = vpop.xlane.xlu0 %1284  ;;  %v1998_v9 = vpop.eup %1997 }
 0x4f0   :  { %v1397_v27 = vpop.f32.mrf.mxu1  ;;  %1999 = vrcp.f32 %v1285_v25 }
 0x4f6   :  { %1569 = vxpose.xlu1.b32.cont [10/16] (narrow) %v2995_v56, 32  ;;  %v2000_v10 = vpop.eup %1999 }
 0x4f7   :  { %v1486_v34 = vpop.f32.mrf.mxu2 }
 0x4f8   :  { %v1487_v45 = vadd.f32 %v1486_v34, %v1397_v27  ;;  %v1399_v33 = vpop.f32.mrf.mxu1 }
 0x4fa   :  { %v1556_v63 = vmul.f32 %v1994_v30, %v1487_v45 }
 0x4fc   :  { %1604 = vxpose.xlu2.b32.cont [13/16] (narrow) %v1556_v63, 32 }
 0x4fe   :  { %1570 = vxpose.xlu1.b32.cont [11/16] (narrow) %v2993_v50, 32 }
 0x4ff   :  { %v1488_v39 = vpop.f32.mrf.mxu2 }
 0x500   :  { %v1489_v15 = vadd.f32 %v1488_v39, %v1399_v33  ;;  %v1402_v17 = vpop.f32.mrf.mxu1 }
 0x502   :  { %v1557_v40 = vmul.f32 %v1996_v51, %v1489_v15 }
 0x504   :  { %1605 = vxpose.xlu2.b32.cont [14/16] (narrow) %v1557_v40, 32 }
 0x506   :  { %1571 = vxpose.xlu1.b32.cont [12/16] (narrow) %v2999_v22, 32 }
 0x507   :  { %v1491_v56 = vpop.f32.mrf.mxu2 }
 0x508   :  { %v1492_v21 = vadd.f32 %v1491_v56, %v1402_v17  ;;  %v1404_v50 = vpop.f32.mrf.mxu1 }
 0x50a   :  { %v1558_v1 = vmul.f32 %v1998_v9, %v1492_v21 }
 0x50c   :  { %1606 = vxpose.xlu2.b32.cont [15/16] (narrow) %v1558_v1, 32 }
 0x50e   :  { %1572 = vxpose.xlu1.b32.cont [13/16] (narrow) %v3011_v16, 32 }
 0x50f   :  { %v1493_v38 = vpop.f32.mrf.mxu2 }
 0x510   :  { %v1494_v6 = vadd.f32 %v1493_v38, %v1404_v50 }
 0x512   :  { %v1559_v36 = vmul.f32 %v2000_v10, %v1494_v6 }
 0x514   :  { %1607 = vxpose.xlu2.b32.end [16/16] (narrow) %v1559_v36, 32 }
 0x516   :  { %1573 = vxpose.xlu1.b32.cont [14/16] (narrow) %v3007_v48, 32 }
 0x51e   :  { %1574 = vxpose.xlu1.b32.cont [15/16] (narrow) %v3009_v18, 32 }
 0x526   :  { %1575 = vxpose.xlu1.b32.end [16/16] (narrow) %v3017_v62, 32 }
 0x535   :  { %v1608_v22 = vpop.trf.xlu2 }
 0x536   :  { %1625 = vst [vmem:[#allocation2 + $0x8] sm:$0xff] %v1608_v22 }
 0x53d   :  { %v1609_v3 = vpop.trf.xlu2 }
 0x53e   :  { %1627 = vst [vmem:[#allocation2 + $0x18] sm:$0xff] %v1609_v3 }
 0x545   :  { %v1610_v57 = vpop.trf.xlu2 }
 0x546   :  { %1629 = vst [vmem:[#allocation2 + $0x28] sm:$0xff] %v1610_v57 }
 0x54d   :  { %v1611_v41 = vpop.trf.xlu2 }
 0x54e   :  { %1631 = vst [vmem:[#allocation2 + $0x38] sm:$0xff] %v1611_v41 }
 0x552   :  { %v1576_v16 = vpop.trf.xlu1 }
 0x553   :  { %1624 = vst [vmem:[#allocation2] sm:$0xff] %v1576_v16 }
 0x55a   :  { %v1577_v46 = vpop.trf.xlu1 }
 0x55b   :  { %1626 = vst [vmem:[#allocation2 + $0x10] sm:$0xff] %v1577_v46 }
 0x562   :  { %v1578_v23 = vpop.trf.xlu1 }
 0x563   :  { %1628 = vst [vmem:[#allocation2 + $0x20] sm:$0xff] %v1578_v23 }
 0x56a   :  { %v1579_v48 = vpop.trf.xlu1 }
 0x56b   :  { %1630 = vst [vmem:[#allocation2 + $0x30] sm:$0xff] %v1579_v48 }
 0x56c   :  { %1644 = dma.vmem_to_hbm [thread:$0]  %s1637_s10, 1024, %s1639_s13, [#allocation3], %s2028_s14, %s2028_s14, %s2029_s15  }
 0x56d   :  { %2025 = dma.done.wait [#allocation3], 1024  }
 0x56e   :  { %2026 = vsyncadd [#allocation3], 4294966272 }
 0x56f   :  { %1649 = vsyncpa [#allocation3], 1 }

</bundles_post_ra>
